<compile_context>
chip_gen: v7x
topology: tpu7x:2x2x1
jax: 0.10.0
libtpu: 0.0.40
codegen_flags: <defaults>
</compile_context>

<pallas_src>
import jax
import jax.numpy as jnp
from jax import lax
from jax.experimental import pallas as pl
from jax.experimental.pallas import tpu as pltpu


def _embed_fixes_kernel(ids_ref, offs_ref, lens_ref, has_fix_ref,   # scalar prefetch (SMEM)
                        table_hbm, fix_hbm,                         # inputs (HBM, pl.ANY)
                        out_ref,                                    # output block (VMEM)
                        fix_vmem, sems):                            # scratch
    i = pl.program_id(0)
    Bt, S, D = out_ref.shape
    MAXF = offs_ref.shape[1]
    MAXFL = fix_vmem.shape[0] // Bt          # = MAXF * MAXL (flattened in wrapper)
    MAXL = MAXFL // MAXF

    gather_sem = sems.at[0]
    fix_sem = sems.at[1]

    # ---- 1) issue one row DMA per token: HBM table -> output VMEM block ----
    for bb in range(Bt):                     # Bt, S small & static
        for s in range(S):
            row_id = ids_ref[i * Bt + bb, s]                     # SMEM scalar
            pltpu.make_async_copy(
                table_hbm.at[pl.ds(row_id, 1)],                  # (1, D) row in HBM
                out_ref.at[bb, pl.ds(s, 1)],                     # (1, D) row of output
                gather_sem,
            ).start()

    has_fix = has_fix_ref[i] > 0

    # ---- 2) no-fix fast path: only DMA the fix rows when the block needs them
    @pl.when(has_fix)
    def _start_fix_dma():
        start = pl.multiple_of(i * (Bt * MAXFL), Bt * MAXFL)
        pltpu.make_async_copy(
            fix_hbm.at[pl.ds(start, Bt * MAXFL)], fix_vmem, fix_sem).start()

    # ---- 3) fix selection mask (SMEM scalars + iotas) -- overlaps the DMAs --
    pos = lax.broadcasted_iota(jnp.int32, (Bt * S, 1), 0)        # hoisted, built once
    sel_idx = jnp.zeros((Bt * S, 1), jnp.int32)
    hit_any = jnp.zeros((Bt * S, 1), jnp.bool_)
    for bb in range(Bt):
        local = pos - bb * S                                     # row within sample bb
        in_sample = (local >= 0) & (local < S)
        for f in range(MAXF):
            off = offs_ref[i * Bt + bb, f]                       # SMEM scalars
            ln = lens_ref[i * Bt + bb, f]
            emb_len = jnp.minimum(jnp.minimum(S - off - 1, ln), MAXL)
            rel = local - (off + 1)
            hit = in_sample & (rel >= 0) & (rel < emb_len)
            sel_idx = jnp.where(hit, bb * MAXFL + f * MAXL + rel, sel_idx)
            hit_any = jnp.logical_or(hit_any, hit)               # last writer wins
    fix_iota = lax.broadcasted_iota(jnp.int32, (Bt * S, Bt * MAXFL), 1)
    onehot = (sel_idx == fix_iota) & hit_any                     # exact 0/1

    # ---- 4) wait for all gathered rows (shared sem, reconstructed waits) ----
    for bb in range(Bt):
        for s in range(S):
            pltpu.make_async_copy(
                table_hbm.at[pl.ds(0, 1)],
                out_ref.at[bb, pl.ds(s, 1)],
                gather_sem,
            ).wait()

    # ---- 5) apply fixes; skipped entirely for fix-free blocks ---------------
    @pl.when(has_fix)
    def _apply_fixes():
        start = pl.multiple_of(i * (Bt * MAXFL), Bt * MAXFL)
        pltpu.make_async_copy(
            fix_hbm.at[pl.ds(start, Bt * MAXFL)], fix_vmem, fix_sem).wait()
        fix_rows = fix_vmem[...]                                 # (Bt*MAXFL, D)
        # Single fused MXU pass; onehot in fix dtype -> native bf16 path if bf16.
        repl = jnp.dot(onehot.astype(fix_rows.dtype), fix_rows,
                       preferred_element_type=jnp.float32)       # (Bt*S, D)
        repl = repl.reshape(Bt, S, D).astype(out_ref.dtype)
        hit3 = hit_any.reshape(Bt, S, 1)
        out_ref[...] = jnp.where(hit3, repl, out_ref[...])


def embeddings_with_fixes(input_ids, table, fix_vecs, fix_offsets, fix_lens,
                          *, block_b=8):
    """out[b] = table[input_ids[b]] with per-sample fixes spliced in."""
    B, S = input_ids.shape
    V, D = table.shape
    _, MAXF, MAXL, _ = fix_vecs.shape
    MAXFL = MAXF * MAXL

    # Batch tile; pad B up to a multiple of Bt (pad samples: id 0, no fixes).
    Bt = min(block_b, B)
    nb = pl.cdiv(B, Bt)
    Bpad = nb * Bt
    pad = Bpad - B

    ids = jnp.clip(input_ids.astype(jnp.int32), 0, V - 1)        # safe row gather
    offs = fix_offsets.astype(jnp.int32)
    lens = fix_lens.astype(jnp.int32)
    if pad:
        ids = jnp.concatenate([ids, jnp.zeros((pad, S), jnp.int32)], axis=0)
        offs = jnp.concatenate([offs, jnp.zeros((pad, MAXF), jnp.int32)], axis=0)
        lens = jnp.concatenate([lens, jnp.zeros((pad, MAXF), jnp.int32)], axis=0)
        fix_vecs = jnp.concatenate(
            [fix_vecs, jnp.zeros((pad, MAXF, MAXL, D), fix_vecs.dtype)], axis=0)

    fix_flat = fix_vecs.reshape(Bpad * MAXFL, D)                 # layout plumbing only
    block_has_fix = (lens.reshape(nb, Bt * MAXF).sum(axis=1) > 0).astype(jnp.int32)

    grid_spec = pltpu.PrefetchScalarGridSpec(
        num_scalar_prefetch=4,               # ids, offsets, lens, has_fix -> SMEM
        grid=(nb,),
        in_specs=[
            pl.BlockSpec(memory_space=pl.ANY),   # embedding table stays in HBM
            pl.BlockSpec(memory_space=pl.ANY),   # fix rows stay in HBM (cond. DMA)
        ],
        out_specs=pl.BlockSpec((Bt, S, D), lambda i, *_: (i, 0, 0)),
        scratch_shapes=[
            pltpu.VMEM((Bt * MAXFL, D), fix_vecs.dtype),   # fix rows for one block
            pltpu.SemaphoreType.DMA((2,)),                 # [0]=row gathers, [1]=fix copy
        ],
    )
    out = pl.pallas_call(
        _embed_fixes_kernel,
        out_shape=jax.ShapeDtypeStruct((Bpad, S, D), table.dtype),
        grid_spec=grid_spec,
        compiler_params=pltpu.CompilerParams(
            dimension_semantics=("parallel",)),  # batch blocks fully independent
    )(ids, offs, lens, block_has_fix, table, fix_flat)
    return out[:B]


def reference(input_ids, table, fix_vecs, fix_offsets, fix_lens):
    """Pure-JAX mirror of the PyTorch forward (concat-based replacement)."""
    emb = table[input_ids]                      # (B, S, D)
    B, S, _ = emb.shape
    outs = []
    for b in range(B):
        t = emb[b]
        for f in range(fix_vecs.shape[1]):
            off = int(fix_offsets[b, f])
            ln = int(fix_lens[b, f])
            vec = fix_vecs[b, f, :ln]           # slicing caps ln at MAXL
            emb_len = min(S - off - 1, vec.shape[0])
            t = jnp.concatenate(
                [t[:off + 1], vec[:emb_len], t[off + 1 + emb_len:]], axis=0)
        outs.append(t)
    return jnp.stack(outs)


if __name__ == "__main__":
    # Small shapes: D lane-dense (multiple of 128); block 1 has no fixes so the
    # pl.when fast path is exercised alongside the fix path of block 0.
    B, S, V, D, MAXF, MAXL = 4, 8, 64, 128, 2, 4
    key = jax.random.PRNGKey(0)
    k1, k2, k3 = jax.random.split(key, 3)

    table = jax.random.normal(k1, (V, D), dtype=jnp.float32)
    input_ids = jax.random.randint(k2, (B, S), 0, V, dtype=jnp.int32)
    fix_vecs = jax.random.normal(k3, (B, MAXF, MAXL, D), dtype=jnp.float32)
    # (offset, length) pairs; length 0 == unused slot.  Batch 0/1 include an
    # overlap (fix1 overwrites part of fix0) and a len > MAXL clamp case;
    # batches 2/3 have no fixes at all (fast-path block).
    fix_offsets = jnp.array([[1, 2], [0, 3], [0, 0], [0, 0]], dtype=jnp.int32)
    fix_lens = jnp.array([[2, 3], [4, 9], [0, 0], [0, 0]], dtype=jnp.int32)

    out = embeddings_with_fixes(input_ids, table, fix_vecs, fix_offsets, fix_lens,
                                block_b=2)
    out = jax.block_until_ready(out)

    ref = reference(input_ids, table, fix_vecs, fix_offsets, fix_lens)
    assert out.shape == (B, S, D), out.shape
    assert jnp.allclose(out, ref, atol=1e-5, rtol=1e-5), "mismatch vs reference"
    print("KERNEL_OK")
</pallas_src>

<mosaic_0001>
module attributes {stable_mosaic.version = 11 : i64} {
  func.func @_embed_fixes_kernel(%arg0: i32, %arg1: memref<4x8xi32, #tpu.memory_space<smem>>, %arg2: memref<4x2xi32, #tpu.memory_space<smem>>, %arg3: memref<4x2xi32, #tpu.memory_space<smem>>, %arg4: memref<2xi32, #tpu.memory_space<smem>>, %arg5: memref<64x128xf32, #tpu.memory_space<any>>, %arg6: memref<32x128xf32, #tpu.memory_space<any>>, %arg7: memref<2x8x128xf32, #tpu.memory_space<vmem>>, %arg8: memref<16x128xf32, #tpu.memory_space<vmem>>, %arg9: memref<2x!tpu.dma_semaphore, #tpu.memory_space<semaphore_mem>>) attributes {dimension_semantics = [#tpu.dimension_semantics<parallel>], iteration_bounds = array<i64: 2>, scalar_prefetch = 4 : i64, scratch_operands = 2 : i64, tpu.core_type = #tpu.core_type<tc>, window_params = [{}, {}, {transform_indices = @transform_2, window_bounds = array<i64: 2, 8, 128>}]} {
    %c2_i32 = arith.constant 2 : i32
    %0 = arith.muli %arg0, %c2_i32 : i32
    %c0_i32 = arith.constant 0 : i32
    %1 = arith.addi %0, %c0_i32 : i32
    %2 = arith.index_cast %1 : i32 to index
    %c0 = arith.constant 0 : index
    %3 = memref.load %arg1[%2, %c0] : memref<4x8xi32, #tpu.memory_space<smem>>
    %c0_i32_0 = arith.constant 0 : i32
    %c0_i32_1 = arith.constant 0 : i32
    %c0_i32_2 = arith.constant 0 : i32
    %4 = tpu.memref_slice %arg5[%3, %c0_i32_2] : memref<64x128xf32, #tpu.memory_space<any>> -> memref<1x128xf32, #tpu.memory_space<any>>
    %c0_i32_3 = arith.constant 0 : i32
    %c0_i32_4 = arith.constant 0 : i32
    %5 = tpu.memref_slice %arg7[%c0_i32_0, %c0_i32_3, %c0_i32_4] : memref<2x8x128xf32, #tpu.memory_space<vmem>> -> memref<1x1x128xf32, #tpu.memory_space<vmem>>
    %6 = tpu.memref_squeeze %5 : memref<1x1x128xf32, #tpu.memory_space<vmem>> -> memref<1x128xf32, #tpu.memory_space<vmem>>
    %7 = tpu.memref_slice %arg9[%c0_i32_1] : memref<2x!tpu.dma_semaphore, #tpu.memory_space<semaphore_mem>> -> memref<1x!tpu.dma_semaphore, #tpu.memory_space<semaphore_mem>>
    %8 = tpu.memref_squeeze %7 : memref<1x!tpu.dma_semaphore, #tpu.memory_space<semaphore_mem>> -> memref<!tpu.dma_semaphore, #tpu.memory_space<semaphore_mem>>
    tpu.enqueue_dma source(%4 : memref<1x128xf32, #tpu.memory_space<any>>) target(%6 : memref<1x128xf32, #tpu.memory_space<vmem>>) target_semaphore(%8 : memref<!tpu.dma_semaphore, #tpu.memory_space<semaphore_mem>>)
    %c2_i32_5 = arith.constant 2 : i32
    %9 = arith.muli %arg0, %c2_i32_5 : i32
    %c0_i32_6 = arith.constant 0 : i32
    %10 = arith.addi %9, %c0_i32_6 : i32
    %11 = arith.index_cast %10 : i32 to index
    %c1 = arith.constant 1 : index
    %12 = memref.load %arg1[%11, %c1] : memref<4x8xi32, #tpu.memory_space<smem>>
    %c0_i32_7 = arith.constant 0 : i32
    %c0_i32_8 = arith.constant 0 : i32
    %c0_i32_9 = arith.constant 0 : i32
    %13 = tpu.memref_slice %arg5[%12, %c0_i32_9] : memref<64x128xf32, #tpu.memory_space<any>> -> memref<1x128xf32, #tpu.memory_space<any>>
    %c1_i32 = arith.constant 1 : i32
    %c0_i32_10 = arith.constant 0 : i32
    %14 = tpu.memref_slice %arg7[%c0_i32_7, %c1_i32, %c0_i32_10] : memref<2x8x128xf32, #tpu.memory_space<vmem>> -> memref<1x1x128xf32, #tpu.memory_space<vmem>>
    %15 = tpu.memref_squeeze %14 : memref<1x1x128xf32, #tpu.memory_space<vmem>> -> memref<1x128xf32, #tpu.memory_space<vmem>>
    %16 = tpu.memref_slice %arg9[%c0_i32_8] : memref<2x!tpu.dma_semaphore, #tpu.memory_space<semaphore_mem>> -> memref<1x!tpu.dma_semaphore, #tpu.memory_space<semaphore_mem>>
    %17 = tpu.memref_squeeze %16 : memref<1x!tpu.dma_semaphore, #tpu.memory_space<semaphore_mem>> -> memref<!tpu.dma_semaphore, #tpu.memory_space<semaphore_mem>>
    tpu.enqueue_dma source(%13 : memref<1x128xf32, #tpu.memory_space<any>>) target(%15 : memref<1x128xf32, #tpu.memory_space<vmem>>) target_semaphore(%17 : memref<!tpu.dma_semaphore, #tpu.memory_space<semaphore_mem>>)
    %c2_i32_11 = arith.constant 2 : i32
    %18 = arith.muli %arg0, %c2_i32_11 : i32
    %c0_i32_12 = arith.constant 0 : i32
    %19 = arith.addi %18, %c0_i32_12 : i32
    %20 = arith.index_cast %19 : i32 to index
    %c2 = arith.constant 2 : index
    %21 = memref.load %arg1[%20, %c2] : memref<4x8xi32, #tpu.memory_space<smem>>
    %c0_i32_13 = arith.constant 0 : i32
    %c0_i32_14 = arith.constant 0 : i32
    %c0_i32_15 = arith.constant 0 : i32
    %22 = tpu.memref_slice %arg5[%21, %c0_i32_15] : memref<64x128xf32, #tpu.memory_space<any>> -> memref<1x128xf32, #tpu.memory_space<any>>
    %c2_i32_16 = arith.constant 2 : i32
    %c0_i32_17 = arith.constant 0 : i32
    %23 = tpu.memref_slice %arg7[%c0_i32_13, %c2_i32_16, %c0_i32_17] : memref<2x8x128xf32, #tpu.memory_space<vmem>> -> memref<1x1x128xf32, #tpu.memory_space<vmem>>
    %24 = tpu.memref_squeeze %23 : memref<1x1x128xf32, #tpu.memory_space<vmem>> -> memref<1x128xf32, #tpu.memory_space<vmem>>
    %25 = tpu.memref_slice %arg9[%c0_i32_14] : memref<2x!tpu.dma_semaphore, #tpu.memory_space<semaphore_mem>> -> memref<1x!tpu.dma_semaphore, #tpu.memory_space<semaphore_mem>>
    %26 = tpu.memref_squeeze %25 : memref<1x!tpu.dma_semaphore, #tpu.memory_space<semaphore_mem>> -> memref<!tpu.dma_semaphore, #tpu.memory_space<semaphore_mem>>
    tpu.enqueue_dma source(%22 : memref<1x128xf32, #tpu.memory_space<any>>) target(%24 : memref<1x128xf32, #tpu.memory_space<vmem>>) target_semaphore(%26 : memref<!tpu.dma_semaphore, #tpu.memory_space<semaphore_mem>>)
    %c2_i32_18 = arith.constant 2 : i32
    %27 = arith.muli %arg0, %c2_i32_18 : i32
    %c0_i32_19 = arith.constant 0 : i32
    %28 = arith.addi %27, %c0_i32_19 : i32
    %29 = arith.index_cast %28 : i32 to index
    %c3 = arith.constant 3 : index
    %30 = memref.load %arg1[%29, %c3] : memref<4x8xi32, #tpu.memory_space<smem>>
    %c0_i32_20 = arith.constant 0 : i32
    %c0_i32_21 = arith.constant 0 : i32
    %c0_i32_22 = arith.constant 0 : i32
    %31 = tpu.memref_slice %arg5[%30, %c0_i32_22] : memref<64x128xf32, #tpu.memory_space<any>> -> memref<1x128xf32, #tpu.memory_space<any>>
    %c3_i32 = arith.constant 3 : i32
    %c0_i32_23 = arith.constant 0 : i32
    %32 = tpu.memref_slice %arg7[%c0_i32_20, %c3_i32, %c0_i32_23] : memref<2x8x128xf32, #tpu.memory_space<vmem>> -> memref<1x1x128xf32, #tpu.memory_space<vmem>>
    %33 = tpu.memref_squeeze %32 : memref<1x1x128xf32, #tpu.memory_space<vmem>> -> memref<1x128xf32, #tpu.memory_space<vmem>>
    %34 = tpu.memref_slice %arg9[%c0_i32_21] : memref<2x!tpu.dma_semaphore, #tpu.memory_space<semaphore_mem>> -> memref<1x!tpu.dma_semaphore, #tpu.memory_space<semaphore_mem>>
    %35 = tpu.memref_squeeze %34 : memref<1x!tpu.dma_semaphore, #tpu.memory_space<semaphore_mem>> -> memref<!tpu.dma_semaphore, #tpu.memory_space<semaphore_mem>>
    tpu.enqueue_dma source(%31 : memref<1x128xf32, #tpu.memory_space<any>>) target(%33 : memref<1x128xf32, #tpu.memory_space<vmem>>) target_semaphore(%35 : memref<!tpu.dma_semaphore, #tpu.memory_space<semaphore_mem>>)
    %c2_i32_24 = arith.constant 2 : i32
    %36 = arith.muli %arg0, %c2_i32_24 : i32
    %c0_i32_25 = arith.constant 0 : i32
    %37 = arith.addi %36, %c0_i32_25 : i32
    %38 = arith.index_cast %37 : i32 to index
    %c4 = arith.constant 4 : index
    %39 = memref.load %arg1[%38, %c4] : memref<4x8xi32, #tpu.memory_space<smem>>
    %c0_i32_26 = arith.constant 0 : i32
    %c0_i32_27 = arith.constant 0 : i32
    %c0_i32_28 = arith.constant 0 : i32
    %40 = tpu.memref_slice %arg5[%39, %c0_i32_28] : memref<64x128xf32, #tpu.memory_space<any>> -> memref<1x128xf32, #tpu.memory_space<any>>
    %c4_i32 = arith.constant 4 : i32
    %c0_i32_29 = arith.constant 0 : i32
    %41 = tpu.memref_slice %arg7[%c0_i32_26, %c4_i32, %c0_i32_29] : memref<2x8x128xf32, #tpu.memory_space<vmem>> -> memref<1x1x128xf32, #tpu.memory_space<vmem>>
    %42 = tpu.memref_squeeze %41 : memref<1x1x128xf32, #tpu.memory_space<vmem>> -> memref<1x128xf32, #tpu.memory_space<vmem>>
    %43 = tpu.memref_slice %arg9[%c0_i32_27] : memref<2x!tpu.dma_semaphore, #tpu.memory_space<semaphore_mem>> -> memref<1x!tpu.dma_semaphore, #tpu.memory_space<semaphore_mem>>
    %44 = tpu.memref_squeeze %43 : memref<1x!tpu.dma_semaphore, #tpu.memory_space<semaphore_mem>> -> memref<!tpu.dma_semaphore, #tpu.memory_space<semaphore_mem>>
    tpu.enqueue_dma source(%40 : memref<1x128xf32, #tpu.memory_space<any>>) target(%42 : memref<1x128xf32, #tpu.memory_space<vmem>>) target_semaphore(%44 : memref<!tpu.dma_semaphore, #tpu.memory_space<semaphore_mem>>)
    %c2_i32_30 = arith.constant 2 : i32
    %45 = arith.muli %arg0, %c2_i32_30 : i32
    %c0_i32_31 = arith.constant 0 : i32
    %46 = arith.addi %45, %c0_i32_31 : i32
    %47 = arith.index_cast %46 : i32 to index
    %c5 = arith.constant 5 : index
    %48 = memref.load %arg1[%47, %c5] : memref<4x8xi32, #tpu.memory_space<smem>>
    %c0_i32_32 = arith.constant 0 : i32
    %c0_i32_33 = arith.constant 0 : i32
    %c0_i32_34 = arith.constant 0 : i32
    %49 = tpu.memref_slice %arg5[%48, %c0_i32_34] : memref<64x128xf32, #tpu.memory_space<any>> -> memref<1x128xf32, #tpu.memory_space<any>>
    %c5_i32 = arith.constant 5 : i32
    %c0_i32_35 = arith.constant 0 : i32
    %50 = tpu.memref_slice %arg7[%c0_i32_32, %c5_i32, %c0_i32_35] : memref<2x8x128xf32, #tpu.memory_space<vmem>> -> memref<1x1x128xf32, #tpu.memory_space<vmem>>
    %51 = tpu.memref_squeeze %50 : memref<1x1x128xf32, #tpu.memory_space<vmem>> -> memref<1x128xf32, #tpu.memory_space<vmem>>
    %52 = tpu.memref_slice %arg9[%c0_i32_33] : memref<2x!tpu.dma_semaphore, #tpu.memory_space<semaphore_mem>> -> memref<1x!tpu.dma_semaphore, #tpu.memory_space<semaphore_mem>>
    %53 = tpu.memref_squeeze %52 : memref<1x!tpu.dma_semaphore, #tpu.memory_space<semaphore_mem>> -> memref<!tpu.dma_semaphore, #tpu.memory_space<semaphore_mem>>
    tpu.enqueue_dma source(%49 : memref<1x128xf32, #tpu.memory_space<any>>) target(%51 : memref<1x128xf32, #tpu.memory_space<vmem>>) target_semaphore(%53 : memref<!tpu.dma_semaphore, #tpu.memory_space<semaphore_mem>>)
    %c2_i32_36 = arith.constant 2 : i32
    %54 = arith.muli %arg0, %c2_i32_36 : i32
    %c0_i32_37 = arith.constant 0 : i32
    %55 = arith.addi %54, %c0_i32_37 : i32
    %56 = arith.index_cast %55 : i32 to index
    %c6 = arith.constant 6 : index
    %57 = memref.load %arg1[%56, %c6] : memref<4x8xi32, #tpu.memory_space<smem>>
    %c0_i32_38 = arith.constant 0 : i32
    %c0_i32_39 = arith.constant 0 : i32
    %c0_i32_40 = arith.constant 0 : i32
    %58 = tpu.memref_slice %arg5[%57, %c0_i32_40] : memref<64x128xf32, #tpu.memory_space<any>> -> memref<1x128xf32, #tpu.memory_space<any>>
    %c6_i32 = arith.constant 6 : i32
    %c0_i32_41 = arith.constant 0 : i32
    %59 = tpu.memref_slice %arg7[%c0_i32_38, %c6_i32, %c0_i32_41] : memref<2x8x128xf32, #tpu.memory_space<vmem>> -> memref<1x1x128xf32, #tpu.memory_space<vmem>>
    %60 = tpu.memref_squeeze %59 : memref<1x1x128xf32, #tpu.memory_space<vmem>> -> memref<1x128xf32, #tpu.memory_space<vmem>>
    %61 = tpu.memref_slice %arg9[%c0_i32_39] : memref<2x!tpu.dma_semaphore, #tpu.memory_space<semaphore_mem>> -> memref<1x!tpu.dma_semaphore, #tpu.memory_space<semaphore_mem>>
    %62 = tpu.memref_squeeze %61 : memref<1x!tpu.dma_semaphore, #tpu.memory_space<semaphore_mem>> -> memref<!tpu.dma_semaphore, #tpu.memory_space<semaphore_mem>>
    tpu.enqueue_dma source(%58 : memref<1x128xf32, #tpu.memory_space<any>>) target(%60 : memref<1x128xf32, #tpu.memory_space<vmem>>) target_semaphore(%62 : memref<!tpu.dma_semaphore, #tpu.memory_space<semaphore_mem>>)
    %c2_i32_42 = arith.constant 2 : i32
    %63 = arith.muli %arg0, %c2_i32_42 : i32
    %c0_i32_43 = arith.constant 0 : i32
    %64 = arith.addi %63, %c0_i32_43 : i32
    %65 = arith.index_cast %64 : i32 to index
    %c7 = arith.constant 7 : index
    %66 = memref.load %arg1[%65, %c7] : memref<4x8xi32, #tpu.memory_space<smem>>
    %c0_i32_44 = arith.constant 0 : i32
    %c0_i32_45 = arith.constant 0 : i32
    %c0_i32_46 = arith.constant 0 : i32
    %67 = tpu.memref_slice %arg5[%66, %c0_i32_46] : memref<64x128xf32, #tpu.memory_space<any>> -> memref<1x128xf32, #tpu.memory_space<any>>
    %c7_i32 = arith.constant 7 : i32
    %c0_i32_47 = arith.constant 0 : i32
    %68 = tpu.memref_slice %arg7[%c0_i32_44, %c7_i32, %c0_i32_47] : memref<2x8x128xf32, #tpu.memory_space<vmem>> -> memref<1x1x128xf32, #tpu.memory_space<vmem>>
    %69 = tpu.memref_squeeze %68 : memref<1x1x128xf32, #tpu.memory_space<vmem>> -> memref<1x128xf32, #tpu.memory_space<vmem>>
    %70 = tpu.memref_slice %arg9[%c0_i32_45] : memref<2x!tpu.dma_semaphore, #tpu.memory_space<semaphore_mem>> -> memref<1x!tpu.dma_semaphore, #tpu.memory_space<semaphore_mem>>
    %71 = tpu.memref_squeeze %70 : memref<1x!tpu.dma_semaphore, #tpu.memory_space<semaphore_mem>> -> memref<!tpu.dma_semaphore, #tpu.memory_space<semaphore_mem>>
    tpu.enqueue_dma source(%67 : memref<1x128xf32, #tpu.memory_space<any>>) target(%69 : memref<1x128xf32, #tpu.memory_space<vmem>>) target_semaphore(%71 : memref<!tpu.dma_semaphore, #tpu.memory_space<semaphore_mem>>)
    %c2_i32_48 = arith.constant 2 : i32
    %72 = arith.muli %arg0, %c2_i32_48 : i32
    %c1_i32_49 = arith.constant 1 : i32
    %73 = arith.addi %72, %c1_i32_49 : i32
    %74 = arith.index_cast %73 : i32 to index
    %c0_50 = arith.constant 0 : index
    %75 = memref.load %arg1[%74, %c0_50] : memref<4x8xi32, #tpu.memory_space<smem>>
    %c1_i32_51 = arith.constant 1 : i32
    %c0_i32_52 = arith.constant 0 : i32
    %c0_i32_53 = arith.constant 0 : i32
    %76 = tpu.memref_slice %arg5[%75, %c0_i32_53] : memref<64x128xf32, #tpu.memory_space<any>> -> memref<1x128xf32, #tpu.memory_space<any>>
    %c0_i32_54 = arith.constant 0 : i32
    %c0_i32_55 = arith.constant 0 : i32
    %77 = tpu.memref_slice %arg7[%c1_i32_51, %c0_i32_54, %c0_i32_55] : memref<2x8x128xf32, #tpu.memory_space<vmem>> -> memref<1x1x128xf32, #tpu.memory_space<vmem>>
    %78 = tpu.memref_squeeze %77 : memref<1x1x128xf32, #tpu.memory_space<vmem>> -> memref<1x128xf32, #tpu.memory_space<vmem>>
    %79 = tpu.memref_slice %arg9[%c0_i32_52] : memref<2x!tpu.dma_semaphore, #tpu.memory_space<semaphore_mem>> -> memref<1x!tpu.dma_semaphore, #tpu.memory_space<semaphore_mem>>
    %80 = tpu.memref_squeeze %79 : memref<1x!tpu.dma_semaphore, #tpu.memory_space<semaphore_mem>> -> memref<!tpu.dma_semaphore, #tpu.memory_space<semaphore_mem>>
    tpu.enqueue_dma source(%76 : memref<1x128xf32, #tpu.memory_space<any>>) target(%78 : memref<1x128xf32, #tpu.memory_space<vmem>>) target_semaphore(%80 : memref<!tpu.dma_semaphore, #tpu.memory_space<semaphore_mem>>)
    %c2_i32_56 = arith.constant 2 : i32
    %81 = arith.muli %arg0, %c2_i32_56 : i32
    %c1_i32_57 = arith.constant 1 : i32
    %82 = arith.addi %81, %c1_i32_57 : i32
    %83 = arith.index_cast %82 : i32 to index
    %c1_58 = arith.constant 1 : index
    %84 = memref.load %arg1[%83, %c1_58] : memref<4x8xi32, #tpu.memory_space<smem>>
    %c1_i32_59 = arith.constant 1 : i32
    %c0_i32_60 = arith.constant 0 : i32
    %c0_i32_61 = arith.constant 0 : i32
    %85 = tpu.memref_slice %arg5[%84, %c0_i32_61] : memref<64x128xf32, #tpu.memory_space<any>> -> memref<1x128xf32, #tpu.memory_space<any>>
    %c1_i32_62 = arith.constant 1 : i32
    %c0_i32_63 = arith.constant 0 : i32
    %86 = tpu.memref_slice %arg7[%c1_i32_59, %c1_i32_62, %c0_i32_63] : memref<2x8x128xf32, #tpu.memory_space<vmem>> -> memref<1x1x128xf32, #tpu.memory_space<vmem>>
    %87 = tpu.memref_squeeze %86 : memref<1x1x128xf32, #tpu.memory_space<vmem>> -> memref<1x128xf32, #tpu.memory_space<vmem>>
    %88 = tpu.memref_slice %arg9[%c0_i32_60] : memref<2x!tpu.dma_semaphore, #tpu.memory_space<semaphore_mem>> -> memref<1x!tpu.dma_semaphore, #tpu.memory_space<semaphore_mem>>
    %89 = tpu.memref_squeeze %88 : memref<1x!tpu.dma_semaphore, #tpu.memory_space<semaphore_mem>> -> memref<!tpu.dma_semaphore, #tpu.memory_space<semaphore_mem>>
    tpu.enqueue_dma source(%85 : memref<1x128xf32, #tpu.memory_space<any>>) target(%87 : memref<1x128xf32, #tpu.memory_space<vmem>>) target_semaphore(%89 : memref<!tpu.dma_semaphore, #tpu.memory_space<semaphore_mem>>)
    %c2_i32_64 = arith.constant 2 : i32
    %90 = arith.muli %arg0, %c2_i32_64 : i32
    %c1_i32_65 = arith.constant 1 : i32
    %91 = arith.addi %90, %c1_i32_65 : i32
    %92 = arith.index_cast %91 : i32 to index
    %c2_66 = arith.constant 2 : index
    %93 = memref.load %arg1[%92, %c2_66] : memref<4x8xi32, #tpu.memory_space<smem>>
    %c1_i32_67 = arith.constant 1 : i32
    %c0_i32_68 = arith.constant 0 : i32
    %c0_i32_69 = arith.constant 0 : i32
    %94 = tpu.memref_slice %arg5[%93, %c0_i32_69] : memref<64x128xf32, #tpu.memory_space<any>> -> memref<1x128xf32, #tpu.memory_space<any>>
    %c2_i32_70 = arith.constant 2 : i32
    %c0_i32_71 = arith.constant 0 : i32
    %95 = tpu.memref_slice %arg7[%c1_i32_67, %c2_i32_70, %c0_i32_71] : memref<2x8x128xf32, #tpu.memory_space<vmem>> -> memref<1x1x128xf32, #tpu.memory_space<vmem>>
    %96 = tpu.memref_squeeze %95 : memref<1x1x128xf32, #tpu.memory_space<vmem>> -> memref<1x128xf32, #tpu.memory_space<vmem>>
    %97 = tpu.memref_slice %arg9[%c0_i32_68] : memref<2x!tpu.dma_semaphore, #tpu.memory_space<semaphore_mem>> -> memref<1x!tpu.dma_semaphore, #tpu.memory_space<semaphore_mem>>
    %98 = tpu.memref_squeeze %97 : memref<1x!tpu.dma_semaphore, #tpu.memory_space<semaphore_mem>> -> memref<!tpu.dma_semaphore, #tpu.memory_space<semaphore_mem>>
    tpu.enqueue_dma source(%94 : memref<1x128xf32, #tpu.memory_space<any>>) target(%96 : memref<1x128xf32, #tpu.memory_space<vmem>>) target_semaphore(%98 : memref<!tpu.dma_semaphore, #tpu.memory_space<semaphore_mem>>)
    %c2_i32_72 = arith.constant 2 : i32
    %99 = arith.muli %arg0, %c2_i32_72 : i32
    %c1_i32_73 = arith.constant 1 : i32
    %100 = arith.addi %99, %c1_i32_73 : i32
    %101 = arith.index_cast %100 : i32 to index
    %c3_74 = arith.constant 3 : index
    %102 = memref.load %arg1[%101, %c3_74] : memref<4x8xi32, #tpu.memory_space<smem>>
    %c1_i32_75 = arith.constant 1 : i32
    %c0_i32_76 = arith.constant 0 : i32
    %c0_i32_77 = arith.constant 0 : i32
    %103 = tpu.memref_slice %arg5[%102, %c0_i32_77] : memref<64x128xf32, #tpu.memory_space<any>> -> memref<1x128xf32, #tpu.memory_space<any>>
    %c3_i32_78 = arith.constant 3 : i32
    %c0_i32_79 = arith.constant 0 : i32
    %104 = tpu.memref_slice %arg7[%c1_i32_75, %c3_i32_78, %c0_i32_79] : memref<2x8x128xf32, #tpu.memory_space<vmem>> -> memref<1x1x128xf32, #tpu.memory_space<vmem>>
    %105 = tpu.memref_squeeze %104 : memref<1x1x128xf32, #tpu.memory_space<vmem>> -> memref<1x128xf32, #tpu.memory_space<vmem>>
    %106 = tpu.memref_slice %arg9[%c0_i32_76] : memref<2x!tpu.dma_semaphore, #tpu.memory_space<semaphore_mem>> -> memref<1x!tpu.dma_semaphore, #tpu.memory_space<semaphore_mem>>
    %107 = tpu.memref_squeeze %106 : memref<1x!tpu.dma_semaphore, #tpu.memory_space<semaphore_mem>> -> memref<!tpu.dma_semaphore, #tpu.memory_space<semaphore_mem>>
    tpu.enqueue_dma source(%103 : memref<1x128xf32, #tpu.memory_space<any>>) target(%105 : memref<1x128xf32, #tpu.memory_space<vmem>>) target_semaphore(%107 : memref<!tpu.dma_semaphore, #tpu.memory_space<semaphore_mem>>)
    %c2_i32_80 = arith.constant 2 : i32
    %108 = arith.muli %arg0, %c2_i32_80 : i32
    %c1_i32_81 = arith.constant 1 : i32
    %109 = arith.addi %108, %c1_i32_81 : i32
    %110 = arith.index_cast %109 : i32 to index
    %c4_82 = arith.constant 4 : index
    %111 = memref.load %arg1[%110, %c4_82] : memref<4x8xi32, #tpu.memory_space<smem>>
    %c1_i32_83 = arith.constant 1 : i32
    %c0_i32_84 = arith.constant 0 : i32
    %c0_i32_85 = arith.constant 0 : i32
    %112 = tpu.memref_slice %arg5[%111, %c0_i32_85] : memref<64x128xf32, #tpu.memory_space<any>> -> memref<1x128xf32, #tpu.memory_space<any>>
    %c4_i32_86 = arith.constant 4 : i32
    %c0_i32_87 = arith.constant 0 : i32
    %113 = tpu.memref_slice %arg7[%c1_i32_83, %c4_i32_86, %c0_i32_87] : memref<2x8x128xf32, #tpu.memory_space<vmem>> -> memref<1x1x128xf32, #tpu.memory_space<vmem>>
    %114 = tpu.memref_squeeze %113 : memref<1x1x128xf32, #tpu.memory_space<vmem>> -> memref<1x128xf32, #tpu.memory_space<vmem>>
    %115 = tpu.memref_slice %arg9[%c0_i32_84] : memref<2x!tpu.dma_semaphore, #tpu.memory_space<semaphore_mem>> -> memref<1x!tpu.dma_semaphore, #tpu.memory_space<semaphore_mem>>
    %116 = tpu.memref_squeeze %115 : memref<1x!tpu.dma_semaphore, #tpu.memory_space<semaphore_mem>> -> memref<!tpu.dma_semaphore, #tpu.memory_space<semaphore_mem>>
    tpu.enqueue_dma source(%112 : memref<1x128xf32, #tpu.memory_space<any>>) target(%114 : memref<1x128xf32, #tpu.memory_space<vmem>>) target_semaphore(%116 : memref<!tpu.dma_semaphore, #tpu.memory_space<semaphore_mem>>)
    %c2_i32_88 = arith.constant 2 : i32
    %117 = arith.muli %arg0, %c2_i32_88 : i32
    %c1_i32_89 = arith.constant 1 : i32
    %118 = arith.addi %117, %c1_i32_89 : i32
    %119 = arith.index_cast %118 : i32 to index
    %c5_90 = arith.constant 5 : index
    %120 = memref.load %arg1[%119, %c5_90] : memref<4x8xi32, #tpu.memory_space<smem>>
    %c1_i32_91 = arith.constant 1 : i32
    %c0_i32_92 = arith.constant 0 : i32
    %c0_i32_93 = arith.constant 0 : i32
    %121 = tpu.memref_slice %arg5[%120, %c0_i32_93] : memref<64x128xf32, #tpu.memory_space<any>> -> memref<1x128xf32, #tpu.memory_space<any>>
    %c5_i32_94 = arith.constant 5 : i32
    %c0_i32_95 = arith.constant 0 : i32
    %122 = tpu.memref_slice %arg7[%c1_i32_91, %c5_i32_94, %c0_i32_95] : memref<2x8x128xf32, #tpu.memory_space<vmem>> -> memref<1x1x128xf32, #tpu.memory_space<vmem>>
    %123 = tpu.memref_squeeze %122 : memref<1x1x128xf32, #tpu.memory_space<vmem>> -> memref<1x128xf32, #tpu.memory_space<vmem>>
    %124 = tpu.memref_slice %arg9[%c0_i32_92] : memref<2x!tpu.dma_semaphore, #tpu.memory_space<semaphore_mem>> -> memref<1x!tpu.dma_semaphore, #tpu.memory_space<semaphore_mem>>
    %125 = tpu.memref_squeeze %124 : memref<1x!tpu.dma_semaphore, #tpu.memory_space<semaphore_mem>> -> memref<!tpu.dma_semaphore, #tpu.memory_space<semaphore_mem>>
    tpu.enqueue_dma source(%121 : memref<1x128xf32, #tpu.memory_space<any>>) target(%123 : memref<1x128xf32, #tpu.memory_space<vmem>>) target_semaphore(%125 : memref<!tpu.dma_semaphore, #tpu.memory_space<semaphore_mem>>)
    %c2_i32_96 = arith.constant 2 : i32
    %126 = arith.muli %arg0, %c2_i32_96 : i32
    %c1_i32_97 = arith.constant 1 : i32
    %127 = arith.addi %126, %c1_i32_97 : i32
    %128 = arith.index_cast %127 : i32 to index
    %c6_98 = arith.constant 6 : index
    %129 = memref.load %arg1[%128, %c6_98] : memref<4x8xi32, #tpu.memory_space<smem>>
    %c1_i32_99 = arith.constant 1 : i32
    %c0_i32_100 = arith.constant 0 : i32
    %c0_i32_101 = arith.constant 0 : i32
    %130 = tpu.memref_slice %arg5[%129, %c0_i32_101] : memref<64x128xf32, #tpu.memory_space<any>> -> memref<1x128xf32, #tpu.memory_space<any>>
    %c6_i32_102 = arith.constant 6 : i32
    %c0_i32_103 = arith.constant 0 : i32
    %131 = tpu.memref_slice %arg7[%c1_i32_99, %c6_i32_102, %c0_i32_103] : memref<2x8x128xf32, #tpu.memory_space<vmem>> -> memref<1x1x128xf32, #tpu.memory_space<vmem>>
    %132 = tpu.memref_squeeze %131 : memref<1x1x128xf32, #tpu.memory_space<vmem>> -> memref<1x128xf32, #tpu.memory_space<vmem>>
    %133 = tpu.memref_slice %arg9[%c0_i32_100] : memref<2x!tpu.dma_semaphore, #tpu.memory_space<semaphore_mem>> -> memref<1x!tpu.dma_semaphore, #tpu.memory_space<semaphore_mem>>
    %134 = tpu.memref_squeeze %133 : memref<1x!tpu.dma_semaphore, #tpu.memory_space<semaphore_mem>> -> memref<!tpu.dma_semaphore, #tpu.memory_space<semaphore_mem>>
    tpu.enqueue_dma source(%130 : memref<1x128xf32, #tpu.memory_space<any>>) target(%132 : memref<1x128xf32, #tpu.memory_space<vmem>>) target_semaphore(%134 : memref<!tpu.dma_semaphore, #tpu.memory_space<semaphore_mem>>)
    %c2_i32_104 = arith.constant 2 : i32
    %135 = arith.muli %arg0, %c2_i32_104 : i32
    %c1_i32_105 = arith.constant 1 : i32
    %136 = arith.addi %135, %c1_i32_105 : i32
    %137 = arith.index_cast %136 : i32 to index
    %c7_106 = arith.constant 7 : index
    %138 = memref.load %arg1[%137, %c7_106] : memref<4x8xi32, #tpu.memory_space<smem>>
    %c1_i32_107 = arith.constant 1 : i32
    %c0_i32_108 = arith.constant 0 : i32
    %c0_i32_109 = arith.constant 0 : i32
    %139 = tpu.memref_slice %arg5[%138, %c0_i32_109] : memref<64x128xf32, #tpu.memory_space<any>> -> memref<1x128xf32, #tpu.memory_space<any>>
    %c7_i32_110 = arith.constant 7 : i32
    %c0_i32_111 = arith.constant 0 : i32
    %140 = tpu.memref_slice %arg7[%c1_i32_107, %c7_i32_110, %c0_i32_111] : memref<2x8x128xf32, #tpu.memory_space<vmem>> -> memref<1x1x128xf32, #tpu.memory_space<vmem>>
    %141 = tpu.memref_squeeze %140 : memref<1x1x128xf32, #tpu.memory_space<vmem>> -> memref<1x128xf32, #tpu.memory_space<vmem>>
    %142 = tpu.memref_slice %arg9[%c0_i32_108] : memref<2x!tpu.dma_semaphore, #tpu.memory_space<semaphore_mem>> -> memref<1x!tpu.dma_semaphore, #tpu.memory_space<semaphore_mem>>
    %143 = tpu.memref_squeeze %142 : memref<1x!tpu.dma_semaphore, #tpu.memory_space<semaphore_mem>> -> memref<!tpu.dma_semaphore, #tpu.memory_space<semaphore_mem>>
    tpu.enqueue_dma source(%139 : memref<1x128xf32, #tpu.memory_space<any>>) target(%141 : memref<1x128xf32, #tpu.memory_space<vmem>>) target_semaphore(%143 : memref<!tpu.dma_semaphore, #tpu.memory_space<semaphore_mem>>)
    %144 = arith.index_cast %arg0 : i32 to index
    %145 = memref.load %arg4[%144] : memref<2xi32, #tpu.memory_space<smem>>
    %c0_i32_112 = arith.constant 0 : i32
    %146 = arith.cmpi sgt, %145, %c0_i32_112 : i32
    %147 = arith.extui %146 : i1 to i32
    %c1_i32_113 = arith.constant 1 : i32
    %c0_i32_114 = arith.constant 0 : i32
    %148 = arith.cmpi ne, %147, %c0_i32_114 : i32
    scf.if %148 {
      %c16_i32 = arith.constant 16 : i32
      %353 = arith.muli %arg0, %c16_i32 : i32
      %354 = tpu.assume_multiple %353, 16 : i32
      %c0_i32_266 = arith.constant 0 : i32
      %355 = tpu.memref_slice %arg6[%354, %c0_i32_266] : memref<32x128xf32, #tpu.memory_space<any>> -> memref<16x128xf32, #tpu.memory_space<any>>
      %356 = tpu.memref_slice %arg9[%c1_i32_113] : memref<2x!tpu.dma_semaphore, #tpu.memory_space<semaphore_mem>> -> memref<1x!tpu.dma_semaphore, #tpu.memory_space<semaphore_mem>>
      %357 = tpu.memref_squeeze %356 : memref<1x!tpu.dma_semaphore, #tpu.memory_space<semaphore_mem>> -> memref<!tpu.dma_semaphore, #tpu.memory_space<semaphore_mem>>
      tpu.enqueue_dma source(%355 : memref<16x128xf32, #tpu.memory_space<any>>) target(%arg8 : memref<16x128xf32, #tpu.memory_space<vmem>>) target_semaphore(%357 : memref<!tpu.dma_semaphore, #tpu.memory_space<semaphore_mem>>)
    } else {
    }
    %149 = tpu.iota {dimensions = array<i32: 0>} : vector<16x1xi32>
    %c0_i32_115 = arith.constant 0 : i32
    %150 = vector.broadcast %c0_i32_115 : i32 to vector<16x1xi32>
    %false = arith.constant false
    %151 = vector.broadcast %false : i1 to vector<16x1xi1>
    %c0_i32_116 = arith.constant 0 : i32
    %152 = vector.broadcast %c0_i32_116 : i32 to vector<16x1xi32>
    %153 = arith.subi %149, %152 : vector<16x1xi32>
    %c0_i32_117 = arith.constant 0 : i32
    %154 = vector.broadcast %c0_i32_117 : i32 to vector<16x1xi32>
    %155 = arith.cmpi sge, %153, %154 : vector<16x1xi32>
    %c8_i32 = arith.constant 8 : i32
    %156 = vector.broadcast %c8_i32 : i32 to vector<16x1xi32>
    %157 = arith.cmpi slt, %153, %156 : vector<16x1xi32>
    %158 = arith.andi %155, %157 : vector<16x1xi1>
    %c2_i32_118 = arith.constant 2 : i32
    %159 = arith.muli %arg0, %c2_i32_118 : i32
    %c0_i32_119 = arith.constant 0 : i32
    %160 = arith.addi %159, %c0_i32_119 : i32
    %161 = arith.index_cast %160 : i32 to index
    %c0_120 = arith.constant 0 : index
    %162 = memref.load %arg2[%161, %c0_120] : memref<4x2xi32, #tpu.memory_space<smem>>
    %c2_i32_121 = arith.constant 2 : i32
    %163 = arith.muli %arg0, %c2_i32_121 : i32
    %c0_i32_122 = arith.constant 0 : i32
    %164 = arith.addi %163, %c0_i32_122 : i32
    %165 = arith.index_cast %164 : i32 to index
    %c0_123 = arith.constant 0 : index
    %166 = memref.load %arg3[%165, %c0_123] : memref<4x2xi32, #tpu.memory_space<smem>>
    %c8_i32_124 = arith.constant 8 : i32
    %167 = arith.subi %c8_i32_124, %162 : i32
    %c1_i32_125 = arith.constant 1 : i32
    %168 = arith.subi %167, %c1_i32_125 : i32
    %169 = arith.minsi %168, %166 : i32
    %c4_i32_126 = arith.constant 4 : i32
    %170 = arith.minsi %169, %c4_i32_126 : i32
    %c1_i32_127 = arith.constant 1 : i32
    %171 = arith.addi %162, %c1_i32_127 : i32
    %172 = vector.broadcast %171 : i32 to vector<16x1xi32>
    %173 = arith.subi %153, %172 : vector<16x1xi32>
    %c0_i32_128 = arith.constant 0 : i32
    %174 = vector.broadcast %c0_i32_128 : i32 to vector<16x1xi32>
    %175 = arith.cmpi sge, %173, %174 : vector<16x1xi32>
    %176 = arith.andi %158, %175 : vector<16x1xi1>
    %177 = vector.broadcast %170 : i32 to vector<16x1xi32>
    %178 = arith.cmpi slt, %173, %177 : vector<16x1xi32>
    %179 = arith.andi %176, %178 : vector<16x1xi1>
    %c0_i32_129 = arith.constant 0 : i32
    %180 = vector.broadcast %c0_i32_129 : i32 to vector<16x1xi32>
    %181 = arith.addi %180, %173 : vector<16x1xi32>
    %182 = arith.select %179, %181, %150 : vector<16x1xi1>, vector<16x1xi32>
    %183 = arith.ori %151, %179 : vector<16x1xi1>
    %c2_i32_130 = arith.constant 2 : i32
    %184 = arith.muli %arg0, %c2_i32_130 : i32
    %c0_i32_131 = arith.constant 0 : i32
    %185 = arith.addi %184, %c0_i32_131 : i32
    %186 = arith.index_cast %185 : i32 to index
    %c1_132 = arith.constant 1 : index
    %187 = memref.load %arg2[%186, %c1_132] : memref<4x2xi32, #tpu.memory_space<smem>>
    %c2_i32_133 = arith.constant 2 : i32
    %188 = arith.muli %arg0, %c2_i32_133 : i32
    %c0_i32_134 = arith.constant 0 : i32
    %189 = arith.addi %188, %c0_i32_134 : i32
    %190 = arith.index_cast %189 : i32 to index
    %c1_135 = arith.constant 1 : index
    %191 = memref.load %arg3[%190, %c1_135] : memref<4x2xi32, #tpu.memory_space<smem>>
    %c8_i32_136 = arith.constant 8 : i32
    %192 = arith.subi %c8_i32_136, %187 : i32
    %c1_i32_137 = arith.constant 1 : i32
    %193 = arith.subi %192, %c1_i32_137 : i32
    %194 = arith.minsi %193, %191 : i32
    %c4_i32_138 = arith.constant 4 : i32
    %195 = arith.minsi %194, %c4_i32_138 : i32
    %c1_i32_139 = arith.constant 1 : i32
    %196 = arith.addi %187, %c1_i32_139 : i32
    %197 = vector.broadcast %196 : i32 to vector<16x1xi32>
    %198 = arith.subi %153, %197 : vector<16x1xi32>
    %c0_i32_140 = arith.constant 0 : i32
    %199 = vector.broadcast %c0_i32_140 : i32 to vector<16x1xi32>
    %200 = arith.cmpi sge, %198, %199 : vector<16x1xi32>
    %201 = arith.andi %158, %200 : vector<16x1xi1>
    %202 = vector.broadcast %195 : i32 to vector<16x1xi32>
    %203 = arith.cmpi slt, %198, %202 : vector<16x1xi32>
    %204 = arith.andi %201, %203 : vector<16x1xi1>
    %c4_i32_141 = arith.constant 4 : i32
    %205 = vector.broadcast %c4_i32_141 : i32 to vector<16x1xi32>
    %206 = arith.addi %205, %198 : vector<16x1xi32>
    %207 = arith.select %204, %206, %182 : vector<16x1xi1>, vector<16x1xi32>
    %208 = arith.ori %183, %204 : vector<16x1xi1>
    %c8_i32_142 = arith.constant 8 : i32
    %209 = vector.broadcast %c8_i32_142 : i32 to vector<16x1xi32>
    %210 = arith.subi %149, %209 : vector<16x1xi32>
    %c0_i32_143 = arith.constant 0 : i32
    %211 = vector.broadcast %c0_i32_143 : i32 to vector<16x1xi32>
    %212 = arith.cmpi sge, %210, %211 : vector<16x1xi32>
    %c8_i32_144 = arith.constant 8 : i32
    %213 = vector.broadcast %c8_i32_144 : i32 to vector<16x1xi32>
    %214 = arith.cmpi slt, %210, %213 : vector<16x1xi32>
    %215 = arith.andi %212, %214 : vector<16x1xi1>
    %c2_i32_145 = arith.constant 2 : i32
    %216 = arith.muli %arg0, %c2_i32_145 : i32
    %c1_i32_146 = arith.constant 1 : i32
    %217 = arith.addi %216, %c1_i32_146 : i32
    %218 = arith.index_cast %217 : i32 to index
    %c0_147 = arith.constant 0 : index
    %219 = memref.load %arg2[%218, %c0_147] : memref<4x2xi32, #tpu.memory_space<smem>>
    %c2_i32_148 = arith.constant 2 : i32
    %220 = arith.muli %arg0, %c2_i32_148 : i32
    %c1_i32_149 = arith.constant 1 : i32
    %221 = arith.addi %220, %c1_i32_149 : i32
    %222 = arith.index_cast %221 : i32 to index
    %c0_150 = arith.constant 0 : index
    %223 = memref.load %arg3[%222, %c0_150] : memref<4x2xi32, #tpu.memory_space<smem>>
    %c8_i32_151 = arith.constant 8 : i32
    %224 = arith.subi %c8_i32_151, %219 : i32
    %c1_i32_152 = arith.constant 1 : i32
    %225 = arith.subi %224, %c1_i32_152 : i32
    %226 = arith.minsi %225, %223 : i32
    %c4_i32_153 = arith.constant 4 : i32
    %227 = arith.minsi %226, %c4_i32_153 : i32
    %c1_i32_154 = arith.constant 1 : i32
    %228 = arith.addi %219, %c1_i32_154 : i32
    %229 = vector.broadcast %228 : i32 to vector<16x1xi32>
    %230 = arith.subi %210, %229 : vector<16x1xi32>
    %c0_i32_155 = arith.constant 0 : i32
    %231 = vector.broadcast %c0_i32_155 : i32 to vector<16x1xi32>
    %232 = arith.cmpi sge, %230, %231 : vector<16x1xi32>
    %233 = arith.andi %215, %232 : vector<16x1xi1>
    %234 = vector.broadcast %227 : i32 to vector<16x1xi32>
    %235 = arith.cmpi slt, %230, %234 : vector<16x1xi32>
    %236 = arith.andi %233, %235 : vector<16x1xi1>
    %c8_i32_156 = arith.constant 8 : i32
    %237 = vector.broadcast %c8_i32_156 : i32 to vector<16x1xi32>
    %238 = arith.addi %237, %230 : vector<16x1xi32>
    %239 = arith.select %236, %238, %207 : vector<16x1xi1>, vector<16x1xi32>
    %240 = arith.ori %208, %236 : vector<16x1xi1>
    %c2_i32_157 = arith.constant 2 : i32
    %241 = arith.muli %arg0, %c2_i32_157 : i32
    %c1_i32_158 = arith.constant 1 : i32
    %242 = arith.addi %241, %c1_i32_158 : i32
    %243 = arith.index_cast %242 : i32 to index
    %c1_159 = arith.constant 1 : index
    %244 = memref.load %arg2[%243, %c1_159] : memref<4x2xi32, #tpu.memory_space<smem>>
    %c2_i32_160 = arith.constant 2 : i32
    %245 = arith.muli %arg0, %c2_i32_160 : i32
    %c1_i32_161 = arith.constant 1 : i32
    %246 = arith.addi %245, %c1_i32_161 : i32
    %247 = arith.index_cast %246 : i32 to index
    %c1_162 = arith.constant 1 : index
    %248 = memref.load %arg3[%247, %c1_162] : memref<4x2xi32, #tpu.memory_space<smem>>
    %c8_i32_163 = arith.constant 8 : i32
    %249 = arith.subi %c8_i32_163, %244 : i32
    %c1_i32_164 = arith.constant 1 : i32
    %250 = arith.subi %249, %c1_i32_164 : i32
    %251 = arith.minsi %250, %248 : i32
    %c4_i32_165 = arith.constant 4 : i32
    %252 = arith.minsi %251, %c4_i32_165 : i32
    %c1_i32_166 = arith.constant 1 : i32
    %253 = arith.addi %244, %c1_i32_166 : i32
    %254 = vector.broadcast %253 : i32 to vector<16x1xi32>
    %255 = arith.subi %210, %254 : vector<16x1xi32>
    %c0_i32_167 = arith.constant 0 : i32
    %256 = vector.broadcast %c0_i32_167 : i32 to vector<16x1xi32>
    %257 = arith.cmpi sge, %255, %256 : vector<16x1xi32>
    %258 = arith.andi %215, %257 : vector<16x1xi1>
    %259 = vector.broadcast %252 : i32 to vector<16x1xi32>
    %260 = arith.cmpi slt, %255, %259 : vector<16x1xi32>
    %261 = arith.andi %258, %260 : vector<16x1xi1>
    %c12_i32 = arith.constant 12 : i32
    %262 = vector.broadcast %c12_i32 : i32 to vector<16x1xi32>
    %263 = arith.addi %262, %255 : vector<16x1xi32>
    %264 = arith.select %261, %263, %239 : vector<16x1xi1>, vector<16x1xi32>
    %265 = arith.ori %240, %261 : vector<16x1xi1>
    %266 = tpu.iota {dimensions = array<i32: 1>} : vector<16x16xi32>
    %267 = vector.broadcast %264 : vector<16x1xi32> to vector<16x16xi32>
    %268 = arith.cmpi eq, %267, %266 : vector<16x16xi32>
    %269 = vector.broadcast %265 : vector<16x1xi1> to vector<16x16xi1>
    %270 = arith.andi %268, %269 : vector<16x16xi1>
    %c0_i32_168 = arith.constant 0 : i32
    %c0_i32_169 = arith.constant 0 : i32
    %c0_i32_170 = arith.constant 0 : i32
    %c0_i32_171 = arith.constant 0 : i32
    %271 = tpu.memref_slice %arg5[%c0_i32_170, %c0_i32_171] : memref<64x128xf32, #tpu.memory_space<any>> -> memref<1x128xf32, #tpu.memory_space<any>>
    %c0_i32_172 = arith.constant 0 : i32
    %c0_i32_173 = arith.constant 0 : i32
    %272 = tpu.memref_slice %arg7[%c0_i32_168, %c0_i32_172, %c0_i32_173] : memref<2x8x128xf32, #tpu.memory_space<vmem>> -> memref<1x1x128xf32, #tpu.memory_space<vmem>>
    %273 = tpu.memref_squeeze %272 : memref<1x1x128xf32, #tpu.memory_space<vmem>> -> memref<1x128xf32, #tpu.memory_space<vmem>>
    %274 = tpu.memref_slice %arg9[%c0_i32_169] : memref<2x!tpu.dma_semaphore, #tpu.memory_space<semaphore_mem>> -> memref<1x!tpu.dma_semaphore, #tpu.memory_space<semaphore_mem>>
    %275 = tpu.memref_squeeze %274 : memref<1x!tpu.dma_semaphore, #tpu.memory_space<semaphore_mem>> -> memref<!tpu.dma_semaphore, #tpu.memory_space<semaphore_mem>>
    tpu.wait_dma2 semaphore(%275 : memref<!tpu.dma_semaphore, #tpu.memory_space<semaphore_mem>>) src(%271 : memref<1x128xf32, #tpu.memory_space<any>>) dst(%273 : memref<1x128xf32, #tpu.memory_space<vmem>>)
    %c0_i32_174 = arith.constant 0 : i32
    %c0_i32_175 = arith.constant 0 : i32
    %c0_i32_176 = arith.constant 0 : i32
    %c0_i32_177 = arith.constant 0 : i32
    %276 = tpu.memref_slice %arg5[%c0_i32_176, %c0_i32_177] : memref<64x128xf32, #tpu.memory_space<any>> -> memref<1x128xf32, #tpu.memory_space<any>>
    %c1_i32_178 = arith.constant 1 : i32
    %c0_i32_179 = arith.constant 0 : i32
    %277 = tpu.memref_slice %arg7[%c0_i32_174, %c1_i32_178, %c0_i32_179] : memref<2x8x128xf32, #tpu.memory_space<vmem>> -> memref<1x1x128xf32, #tpu.memory_space<vmem>>
    %278 = tpu.memref_squeeze %277 : memref<1x1x128xf32, #tpu.memory_space<vmem>> -> memref<1x128xf32, #tpu.memory_space<vmem>>
    %279 = tpu.memref_slice %arg9[%c0_i32_175] : memref<2x!tpu.dma_semaphore, #tpu.memory_space<semaphore_mem>> -> memref<1x!tpu.dma_semaphore, #tpu.memory_space<semaphore_mem>>
    %280 = tpu.memref_squeeze %279 : memref<1x!tpu.dma_semaphore, #tpu.memory_space<semaphore_mem>> -> memref<!tpu.dma_semaphore, #tpu.memory_space<semaphore_mem>>
    tpu.wait_dma2 semaphore(%280 : memref<!tpu.dma_semaphore, #tpu.memory_space<semaphore_mem>>) src(%276 : memref<1x128xf32, #tpu.memory_space<any>>) dst(%278 : memref<1x128xf32, #tpu.memory_space<vmem>>)
    %c0_i32_180 = arith.constant 0 : i32
    %c0_i32_181 = arith.constant 0 : i32
    %c0_i32_182 = arith.constant 0 : i32
    %c0_i32_183 = arith.constant 0 : i32
    %281 = tpu.memref_slice %arg5[%c0_i32_182, %c0_i32_183] : memref<64x128xf32, #tpu.memory_space<any>> -> memref<1x128xf32, #tpu.memory_space<any>>
    %c2_i32_184 = arith.constant 2 : i32
    %c0_i32_185 = arith.constant 0 : i32
    %282 = tpu.memref_slice %arg7[%c0_i32_180, %c2_i32_184, %c0_i32_185] : memref<2x8x128xf32, #tpu.memory_space<vmem>> -> memref<1x1x128xf32, #tpu.memory_space<vmem>>
    %283 = tpu.memref_squeeze %282 : memref<1x1x128xf32, #tpu.memory_space<vmem>> -> memref<1x128xf32, #tpu.memory_space<vmem>>
    %284 = tpu.memref_slice %arg9[%c0_i32_181] : memref<2x!tpu.dma_semaphore, #tpu.memory_space<semaphore_mem>> -> memref<1x!tpu.dma_semaphore, #tpu.memory_space<semaphore_mem>>
    %285 = tpu.memref_squeeze %284 : memref<1x!tpu.dma_semaphore, #tpu.memory_space<semaphore_mem>> -> memref<!tpu.dma_semaphore, #tpu.memory_space<semaphore_mem>>
    tpu.wait_dma2 semaphore(%285 : memref<!tpu.dma_semaphore, #tpu.memory_space<semaphore_mem>>) src(%281 : memref<1x128xf32, #tpu.memory_space<any>>) dst(%283 : memref<1x128xf32, #tpu.memory_space<vmem>>)
    %c0_i32_186 = arith.constant 0 : i32
    %c0_i32_187 = arith.constant 0 : i32
    %c0_i32_188 = arith.constant 0 : i32
    %c0_i32_189 = arith.constant 0 : i32
    %286 = tpu.memref_slice %arg5[%c0_i32_188, %c0_i32_189] : memref<64x128xf32, #tpu.memory_space<any>> -> memref<1x128xf32, #tpu.memory_space<any>>
    %c3_i32_190 = arith.constant 3 : i32
    %c0_i32_191 = arith.constant 0 : i32
    %287 = tpu.memref_slice %arg7[%c0_i32_186, %c3_i32_190, %c0_i32_191] : memref<2x8x128xf32, #tpu.memory_space<vmem>> -> memref<1x1x128xf32, #tpu.memory_space<vmem>>
    %288 = tpu.memref_squeeze %287 : memref<1x1x128xf32, #tpu.memory_space<vmem>> -> memref<1x128xf32, #tpu.memory_space<vmem>>
    %289 = tpu.memref_slice %arg9[%c0_i32_187] : memref<2x!tpu.dma_semaphore, #tpu.memory_space<semaphore_mem>> -> memref<1x!tpu.dma_semaphore, #tpu.memory_space<semaphore_mem>>
    %290 = tpu.memref_squeeze %289 : memref<1x!tpu.dma_semaphore, #tpu.memory_space<semaphore_mem>> -> memref<!tpu.dma_semaphore, #tpu.memory_space<semaphore_mem>>
    tpu.wait_dma2 semaphore(%290 : memref<!tpu.dma_semaphore, #tpu.memory_space<semaphore_mem>>) src(%286 : memref<1x128xf32, #tpu.memory_space<any>>) dst(%288 : memref<1x128xf32, #tpu.memory_space<vmem>>)
    %c0_i32_192 = arith.constant 0 : i32
    %c0_i32_193 = arith.constant 0 : i32
    %c0_i32_194 = arith.constant 0 : i32
    %c0_i32_195 = arith.constant 0 : i32
    %291 = tpu.memref_slice %arg5[%c0_i32_194, %c0_i32_195] : memref<64x128xf32, #tpu.memory_space<any>> -> memref<1x128xf32, #tpu.memory_space<any>>
    %c4_i32_196 = arith.constant 4 : i32
    %c0_i32_197 = arith.constant 0 : i32
    %292 = tpu.memref_slice %arg7[%c0_i32_192, %c4_i32_196, %c0_i32_197] : memref<2x8x128xf32, #tpu.memory_space<vmem>> -> memref<1x1x128xf32, #tpu.memory_space<vmem>>
    %293 = tpu.memref_squeeze %292 : memref<1x1x128xf32, #tpu.memory_space<vmem>> -> memref<1x128xf32, #tpu.memory_space<vmem>>
    %294 = tpu.memref_slice %arg9[%c0_i32_193] : memref<2x!tpu.dma_semaphore, #tpu.memory_space<semaphore_mem>> -> memref<1x!tpu.dma_semaphore, #tpu.memory_space<semaphore_mem>>
    %295 = tpu.memref_squeeze %294 : memref<1x!tpu.dma_semaphore, #tpu.memory_space<semaphore_mem>> -> memref<!tpu.dma_semaphore, #tpu.memory_space<semaphore_mem>>
    tpu.wait_dma2 semaphore(%295 : memref<!tpu.dma_semaphore, #tpu.memory_space<semaphore_mem>>) src(%291 : memref<1x128xf32, #tpu.memory_space<any>>) dst(%293 : memref<1x128xf32, #tpu.memory_space<vmem>>)
    %c0_i32_198 = arith.constant 0 : i32
    %c0_i32_199 = arith.constant 0 : i32
    %c0_i32_200 = arith.constant 0 : i32
    %c0_i32_201 = arith.constant 0 : i32
    %296 = tpu.memref_slice %arg5[%c0_i32_200, %c0_i32_201] : memref<64x128xf32, #tpu.memory_space<any>> -> memref<1x128xf32, #tpu.memory_space<any>>
    %c5_i32_202 = arith.constant 5 : i32
    %c0_i32_203 = arith.constant 0 : i32
    %297 = tpu.memref_slice %arg7[%c0_i32_198, %c5_i32_202, %c0_i32_203] : memref<2x8x128xf32, #tpu.memory_space<vmem>> -> memref<1x1x128xf32, #tpu.memory_space<vmem>>
    %298 = tpu.memref_squeeze %297 : memref<1x1x128xf32, #tpu.memory_space<vmem>> -> memref<1x128xf32, #tpu.memory_space<vmem>>
    %299 = tpu.memref_slice %arg9[%c0_i32_199] : memref<2x!tpu.dma_semaphore, #tpu.memory_space<semaphore_mem>> -> memref<1x!tpu.dma_semaphore, #tpu.memory_space<semaphore_mem>>
    %300 = tpu.memref_squeeze %299 : memref<1x!tpu.dma_semaphore, #tpu.memory_space<semaphore_mem>> -> memref<!tpu.dma_semaphore, #tpu.memory_space<semaphore_mem>>
    tpu.wait_dma2 semaphore(%300 : memref<!tpu.dma_semaphore, #tpu.memory_space<semaphore_mem>>) src(%296 : memref<1x128xf32, #tpu.memory_space<any>>) dst(%298 : memref<1x128xf32, #tpu.memory_space<vmem>>)
    %c0_i32_204 = arith.constant 0 : i32
    %c0_i32_205 = arith.constant 0 : i32
    %c0_i32_206 = arith.constant 0 : i32
    %c0_i32_207 = arith.constant 0 : i32
    %301 = tpu.memref_slice %arg5[%c0_i32_206, %c0_i32_207] : memref<64x128xf32, #tpu.memory_space<any>> -> memref<1x128xf32, #tpu.memory_space<any>>
    %c6_i32_208 = arith.constant 6 : i32
    %c0_i32_209 = arith.constant 0 : i32
    %302 = tpu.memref_slice %arg7[%c0_i32_204, %c6_i32_208, %c0_i32_209] : memref<2x8x128xf32, #tpu.memory_space<vmem>> -> memref<1x1x128xf32, #tpu.memory_space<vmem>>
    %303 = tpu.memref_squeeze %302 : memref<1x1x128xf32, #tpu.memory_space<vmem>> -> memref<1x128xf32, #tpu.memory_space<vmem>>
    %304 = tpu.memref_slice %arg9[%c0_i32_205] : memref<2x!tpu.dma_semaphore, #tpu.memory_space<semaphore_mem>> -> memref<1x!tpu.dma_semaphore, #tpu.memory_space<semaphore_mem>>
    %305 = tpu.memref_squeeze %304 : memref<1x!tpu.dma_semaphore, #tpu.memory_space<semaphore_mem>> -> memref<!tpu.dma_semaphore, #tpu.memory_space<semaphore_mem>>
    tpu.wait_dma2 semaphore(%305 : memref<!tpu.dma_semaphore, #tpu.memory_space<semaphore_mem>>) src(%301 : memref<1x128xf32, #tpu.memory_space<any>>) dst(%303 : memref<1x128xf32, #tpu.memory_space<vmem>>)
    %c0_i32_210 = arith.constant 0 : i32
    %c0_i32_211 = arith.constant 0 : i32
    %c0_i32_212 = arith.constant 0 : i32
    %c0_i32_213 = arith.constant 0 : i32
    %306 = tpu.memref_slice %arg5[%c0_i32_212, %c0_i32_213] : memref<64x128xf32, #tpu.memory_space<any>> -> memref<1x128xf32, #tpu.memory_space<any>>
    %c7_i32_214 = arith.constant 7 : i32
    %c0_i32_215 = arith.constant 0 : i32
    %307 = tpu.memref_slice %arg7[%c0_i32_210, %c7_i32_214, %c0_i32_215] : memref<2x8x128xf32, #tpu.memory_space<vmem>> -> memref<1x1x128xf32, #tpu.memory_space<vmem>>
    %308 = tpu.memref_squeeze %307 : memref<1x1x128xf32, #tpu.memory_space<vmem>> -> memref<1x128xf32, #tpu.memory_space<vmem>>
    %309 = tpu.memref_slice %arg9[%c0_i32_211] : memref<2x!tpu.dma_semaphore, #tpu.memory_space<semaphore_mem>> -> memref<1x!tpu.dma_semaphore, #tpu.memory_space<semaphore_mem>>
    %310 = tpu.memref_squeeze %309 : memref<1x!tpu.dma_semaphore, #tpu.memory_space<semaphore_mem>> -> memref<!tpu.dma_semaphore, #tpu.memory_space<semaphore_mem>>
    tpu.wait_dma2 semaphore(%310 : memref<!tpu.dma_semaphore, #tpu.memory_space<semaphore_mem>>) src(%306 : memref<1x128xf32, #tpu.memory_space<any>>) dst(%308 : memref<1x128xf32, #tpu.memory_space<vmem>>)
    %c1_i32_216 = arith.constant 1 : i32
    %c0_i32_217 = arith.constant 0 : i32
    %c0_i32_218 = arith.constant 0 : i32
    %c0_i32_219 = arith.constant 0 : i32
    %311 = tpu.memref_slice %arg5[%c0_i32_218, %c0_i32_219] : memref<64x128xf32, #tpu.memory_space<any>> -> memref<1x128xf32, #tpu.memory_space<any>>
    %c0_i32_220 = arith.constant 0 : i32
    %c0_i32_221 = arith.constant 0 : i32
    %312 = tpu.memref_slice %arg7[%c1_i32_216, %c0_i32_220, %c0_i32_221] : memref<2x8x128xf32, #tpu.memory_space<vmem>> -> memref<1x1x128xf32, #tpu.memory_space<vmem>>
    %313 = tpu.memref_squeeze %312 : memref<1x1x128xf32, #tpu.memory_space<vmem>> -> memref<1x128xf32, #tpu.memory_space<vmem>>
    %314 = tpu.memref_slice %arg9[%c0_i32_217] : memref<2x!tpu.dma_semaphore, #tpu.memory_space<semaphore_mem>> -> memref<1x!tpu.dma_semaphore, #tpu.memory_space<semaphore_mem>>
    %315 = tpu.memref_squeeze %314 : memref<1x!tpu.dma_semaphore, #tpu.memory_space<semaphore_mem>> -> memref<!tpu.dma_semaphore, #tpu.memory_space<semaphore_mem>>
    tpu.wait_dma2 semaphore(%315 : memref<!tpu.dma_semaphore, #tpu.memory_space<semaphore_mem>>) src(%311 : memref<1x128xf32, #tpu.memory_space<any>>) dst(%313 : memref<1x128xf32, #tpu.memory_space<vmem>>)
    %c1_i32_222 = arith.constant 1 : i32
    %c0_i32_223 = arith.constant 0 : i32
    %c0_i32_224 = arith.constant 0 : i32
    %c0_i32_225 = arith.constant 0 : i32
    %316 = tpu.memref_slice %arg5[%c0_i32_224, %c0_i32_225] : memref<64x128xf32, #tpu.memory_space<any>> -> memref<1x128xf32, #tpu.memory_space<any>>
    %c1_i32_226 = arith.constant 1 : i32
    %c0_i32_227 = arith.constant 0 : i32
    %317 = tpu.memref_slice %arg7[%c1_i32_222, %c1_i32_226, %c0_i32_227] : memref<2x8x128xf32, #tpu.memory_space<vmem>> -> memref<1x1x128xf32, #tpu.memory_space<vmem>>
    %318 = tpu.memref_squeeze %317 : memref<1x1x128xf32, #tpu.memory_space<vmem>> -> memref<1x128xf32, #tpu.memory_space<vmem>>
    %319 = tpu.memref_slice %arg9[%c0_i32_223] : memref<2x!tpu.dma_semaphore, #tpu.memory_space<semaphore_mem>> -> memref<1x!tpu.dma_semaphore, #tpu.memory_space<semaphore_mem>>
    %320 = tpu.memref_squeeze %319 : memref<1x!tpu.dma_semaphore, #tpu.memory_space<semaphore_mem>> -> memref<!tpu.dma_semaphore, #tpu.memory_space<semaphore_mem>>
    tpu.wait_dma2 semaphore(%320 : memref<!tpu.dma_semaphore, #tpu.memory_space<semaphore_mem>>) src(%316 : memref<1x128xf32, #tpu.memory_space<any>>) dst(%318 : memref<1x128xf32, #tpu.memory_space<vmem>>)
    %c1_i32_228 = arith.constant 1 : i32
    %c0_i32_229 = arith.constant 0 : i32
    %c0_i32_230 = arith.constant 0 : i32
    %c0_i32_231 = arith.constant 0 : i32
    %321 = tpu.memref_slice %arg5[%c0_i32_230, %c0_i32_231] : memref<64x128xf32, #tpu.memory_space<any>> -> memref<1x128xf32, #tpu.memory_space<any>>
    %c2_i32_232 = arith.constant 2 : i32
    %c0_i32_233 = arith.constant 0 : i32
    %322 = tpu.memref_slice %arg7[%c1_i32_228, %c2_i32_232, %c0_i32_233] : memref<2x8x128xf32, #tpu.memory_space<vmem>> -> memref<1x1x128xf32, #tpu.memory_space<vmem>>
    %323 = tpu.memref_squeeze %322 : memref<1x1x128xf32, #tpu.memory_space<vmem>> -> memref<1x128xf32, #tpu.memory_space<vmem>>
    %324 = tpu.memref_slice %arg9[%c0_i32_229] : memref<2x!tpu.dma_semaphore, #tpu.memory_space<semaphore_mem>> -> memref<1x!tpu.dma_semaphore, #tpu.memory_space<semaphore_mem>>
    %325 = tpu.memref_squeeze %324 : memref<1x!tpu.dma_semaphore, #tpu.memory_space<semaphore_mem>> -> memref<!tpu.dma_semaphore, #tpu.memory_space<semaphore_mem>>
    tpu.wait_dma2 semaphore(%325 : memref<!tpu.dma_semaphore, #tpu.memory_space<semaphore_mem>>) src(%321 : memref<1x128xf32, #tpu.memory_space<any>>) dst(%323 : memref<1x128xf32, #tpu.memory_space<vmem>>)
    %c1_i32_234 = arith.constant 1 : i32
    %c0_i32_235 = arith.constant 0 : i32
    %c0_i32_236 = arith.constant 0 : i32
    %c0_i32_237 = arith.constant 0 : i32
    %326 = tpu.memref_slice %arg5[%c0_i32_236, %c0_i32_237] : memref<64x128xf32, #tpu.memory_space<any>> -> memref<1x128xf32, #tpu.memory_space<any>>
    %c3_i32_238 = arith.constant 3 : i32
    %c0_i32_239 = arith.constant 0 : i32
    %327 = tpu.memref_slice %arg7[%c1_i32_234, %c3_i32_238, %c0_i32_239] : memref<2x8x128xf32, #tpu.memory_space<vmem>> -> memref<1x1x128xf32, #tpu.memory_space<vmem>>
    %328 = tpu.memref_squeeze %327 : memref<1x1x128xf32, #tpu.memory_space<vmem>> -> memref<1x128xf32, #tpu.memory_space<vmem>>
    %329 = tpu.memref_slice %arg9[%c0_i32_235] : memref<2x!tpu.dma_semaphore, #tpu.memory_space<semaphore_mem>> -> memref<1x!tpu.dma_semaphore, #tpu.memory_space<semaphore_mem>>
    %330 = tpu.memref_squeeze %329 : memref<1x!tpu.dma_semaphore, #tpu.memory_space<semaphore_mem>> -> memref<!tpu.dma_semaphore, #tpu.memory_space<semaphore_mem>>
    tpu.wait_dma2 semaphore(%330 : memref<!tpu.dma_semaphore, #tpu.memory_space<semaphore_mem>>) src(%326 : memref<1x128xf32, #tpu.memory_space<any>>) dst(%328 : memref<1x128xf32, #tpu.memory_space<vmem>>)
    %c1_i32_240 = arith.constant 1 : i32
    %c0_i32_241 = arith.constant 0 : i32
    %c0_i32_242 = arith.constant 0 : i32
    %c0_i32_243 = arith.constant 0 : i32
    %331 = tpu.memref_slice %arg5[%c0_i32_242, %c0_i32_243] : memref<64x128xf32, #tpu.memory_space<any>> -> memref<1x128xf32, #tpu.memory_space<any>>
    %c4_i32_244 = arith.constant 4 : i32
    %c0_i32_245 = arith.constant 0 : i32
    %332 = tpu.memref_slice %arg7[%c1_i32_240, %c4_i32_244, %c0_i32_245] : memref<2x8x128xf32, #tpu.memory_space<vmem>> -> memref<1x1x128xf32, #tpu.memory_space<vmem>>
    %333 = tpu.memref_squeeze %332 : memref<1x1x128xf32, #tpu.memory_space<vmem>> -> memref<1x128xf32, #tpu.memory_space<vmem>>
    %334 = tpu.memref_slice %arg9[%c0_i32_241] : memref<2x!tpu.dma_semaphore, #tpu.memory_space<semaphore_mem>> -> memref<1x!tpu.dma_semaphore, #tpu.memory_space<semaphore_mem>>
    %335 = tpu.memref_squeeze %334 : memref<1x!tpu.dma_semaphore, #tpu.memory_space<semaphore_mem>> -> memref<!tpu.dma_semaphore, #tpu.memory_space<semaphore_mem>>
    tpu.wait_dma2 semaphore(%335 : memref<!tpu.dma_semaphore, #tpu.memory_space<semaphore_mem>>) src(%331 : memref<1x128xf32, #tpu.memory_space<any>>) dst(%333 : memref<1x128xf32, #tpu.memory_space<vmem>>)
    %c1_i32_246 = arith.constant 1 : i32
    %c0_i32_247 = arith.constant 0 : i32
    %c0_i32_248 = arith.constant 0 : i32
    %c0_i32_249 = arith.constant 0 : i32
    %336 = tpu.memref_slice %arg5[%c0_i32_248, %c0_i32_249] : memref<64x128xf32, #tpu.memory_space<any>> -> memref<1x128xf32, #tpu.memory_space<any>>
    %c5_i32_250 = arith.constant 5 : i32
    %c0_i32_251 = arith.constant 0 : i32
    %337 = tpu.memref_slice %arg7[%c1_i32_246, %c5_i32_250, %c0_i32_251] : memref<2x8x128xf32, #tpu.memory_space<vmem>> -> memref<1x1x128xf32, #tpu.memory_space<vmem>>
    %338 = tpu.memref_squeeze %337 : memref<1x1x128xf32, #tpu.memory_space<vmem>> -> memref<1x128xf32, #tpu.memory_space<vmem>>
    %339 = tpu.memref_slice %arg9[%c0_i32_247] : memref<2x!tpu.dma_semaphore, #tpu.memory_space<semaphore_mem>> -> memref<1x!tpu.dma_semaphore, #tpu.memory_space<semaphore_mem>>
    %340 = tpu.memref_squeeze %339 : memref<1x!tpu.dma_semaphore, #tpu.memory_space<semaphore_mem>> -> memref<!tpu.dma_semaphore, #tpu.memory_space<semaphore_mem>>
    tpu.wait_dma2 semaphore(%340 : memref<!tpu.dma_semaphore, #tpu.memory_space<semaphore_mem>>) src(%336 : memref<1x128xf32, #tpu.memory_space<any>>) dst(%338 : memref<1x128xf32, #tpu.memory_space<vmem>>)
    %c1_i32_252 = arith.constant 1 : i32
    %c0_i32_253 = arith.constant 0 : i32
    %c0_i32_254 = arith.constant 0 : i32
    %c0_i32_255 = arith.constant 0 : i32
    %341 = tpu.memref_slice %arg5[%c0_i32_254, %c0_i32_255] : memref<64x128xf32, #tpu.memory_space<any>> -> memref<1x128xf32, #tpu.memory_space<any>>
    %c6_i32_256 = arith.constant 6 : i32
    %c0_i32_257 = arith.constant 0 : i32
    %342 = tpu.memref_slice %arg7[%c1_i32_252, %c6_i32_256, %c0_i32_257] : memref<2x8x128xf32, #tpu.memory_space<vmem>> -> memref<1x1x128xf32, #tpu.memory_space<vmem>>
    %343 = tpu.memref_squeeze %342 : memref<1x1x128xf32, #tpu.memory_space<vmem>> -> memref<1x128xf32, #tpu.memory_space<vmem>>
    %344 = tpu.memref_slice %arg9[%c0_i32_253] : memref<2x!tpu.dma_semaphore, #tpu.memory_space<semaphore_mem>> -> memref<1x!tpu.dma_semaphore, #tpu.memory_space<semaphore_mem>>
    %345 = tpu.memref_squeeze %344 : memref<1x!tpu.dma_semaphore, #tpu.memory_space<semaphore_mem>> -> memref<!tpu.dma_semaphore, #tpu.memory_space<semaphore_mem>>
    tpu.wait_dma2 semaphore(%345 : memref<!tpu.dma_semaphore, #tpu.memory_space<semaphore_mem>>) src(%341 : memref<1x128xf32, #tpu.memory_space<any>>) dst(%343 : memref<1x128xf32, #tpu.memory_space<vmem>>)
    %c1_i32_258 = arith.constant 1 : i32
    %c0_i32_259 = arith.constant 0 : i32
    %c0_i32_260 = arith.constant 0 : i32
    %c0_i32_261 = arith.constant 0 : i32
    %346 = tpu.memref_slice %arg5[%c0_i32_260, %c0_i32_261] : memref<64x128xf32, #tpu.memory_space<any>> -> memref<1x128xf32, #tpu.memory_space<any>>
    %c7_i32_262 = arith.constant 7 : i32
    %c0_i32_263 = arith.constant 0 : i32
    %347 = tpu.memref_slice %arg7[%c1_i32_258, %c7_i32_262, %c0_i32_263] : memref<2x8x128xf32, #tpu.memory_space<vmem>> -> memref<1x1x128xf32, #tpu.memory_space<vmem>>
    %348 = tpu.memref_squeeze %347 : memref<1x1x128xf32, #tpu.memory_space<vmem>> -> memref<1x128xf32, #tpu.memory_space<vmem>>
    %349 = tpu.memref_slice %arg9[%c0_i32_259] : memref<2x!tpu.dma_semaphore, #tpu.memory_space<semaphore_mem>> -> memref<1x!tpu.dma_semaphore, #tpu.memory_space<semaphore_mem>>
    %350 = tpu.memref_squeeze %349 : memref<1x!tpu.dma_semaphore, #tpu.memory_space<semaphore_mem>> -> memref<!tpu.dma_semaphore, #tpu.memory_space<semaphore_mem>>
    tpu.wait_dma2 semaphore(%350 : memref<!tpu.dma_semaphore, #tpu.memory_space<semaphore_mem>>) src(%346 : memref<1x128xf32, #tpu.memory_space<any>>) dst(%348 : memref<1x128xf32, #tpu.memory_space<vmem>>)
    %351 = arith.extui %146 : i1 to i32
    %c1_i32_264 = arith.constant 1 : i32
    %c0_i32_265 = arith.constant 0 : i32
    %352 = arith.cmpi ne, %351, %c0_i32_265 : i32
    scf.if %352 {
      %c16_i32 = arith.constant 16 : i32
      %353 = arith.muli %arg0, %c16_i32 : i32
      %354 = tpu.assume_multiple %353, 16 : i32
      %c0_i32_266 = arith.constant 0 : i32
      %355 = tpu.memref_slice %arg6[%354, %c0_i32_266] : memref<32x128xf32, #tpu.memory_space<any>> -> memref<16x128xf32, #tpu.memory_space<any>>
      %356 = tpu.memref_slice %arg9[%c1_i32_264] : memref<2x!tpu.dma_semaphore, #tpu.memory_space<semaphore_mem>> -> memref<1x!tpu.dma_semaphore, #tpu.memory_space<semaphore_mem>>
      %357 = tpu.memref_squeeze %356 : memref<1x!tpu.dma_semaphore, #tpu.memory_space<semaphore_mem>> -> memref<!tpu.dma_semaphore, #tpu.memory_space<semaphore_mem>>
      tpu.wait_dma2 semaphore(%357 : memref<!tpu.dma_semaphore, #tpu.memory_space<semaphore_mem>>) src(%355 : memref<16x128xf32, #tpu.memory_space<any>>) dst(%arg8 : memref<16x128xf32, #tpu.memory_space<vmem>>)
      %c0_267 = arith.constant 0 : index
      %c0_268 = arith.constant 0 : index
      %358 = vector.load %arg8[%c0_267, %c0_268] : memref<16x128xf32, #tpu.memory_space<vmem>>, vector<16x128xf32>
      %359 = arith.extui %270 : vector<16x16xi1> to vector<16x16xi32>
      %360 = arith.sitofp %359 : vector<16x16xi32> to vector<16x16xf32>
      %cst = arith.constant dense<0.000000e+00> : vector<16x128xf32>
      %361 = tpu.matmul %360, %358, %cst {dimension_numbers = #tpu.dot_dimension_numbers<[1], [0], [0], [1], [0, 0, 1, 1], [], []>} : vector<16x16xf32>, vector<16x128xf32>, vector<16x128xf32> -> vector<16x128xf32>
      %362 = vector.shape_cast %361 : vector<16x128xf32> to vector<2x8x128xf32>
      %363 = vector.shape_cast %265 : vector<16x1xi1> to vector<2x8x1xi1>
      %c0_269 = arith.constant 0 : index
      %c0_270 = arith.constant 0 : index
      %c0_271 = arith.constant 0 : index
      %364 = vector.load %arg7[%c0_269, %c0_270, %c0_271] : memref<2x8x128xf32, #tpu.memory_space<vmem>>, vector<2x8x128xf32>
      %365 = vector.shape_cast %363 : vector<2x8x1xi1> to vector<2x8x1xi1>
      %366 = vector.broadcast %365 : vector<2x8x1xi1> to vector<2x8x128xi1>
      %367 = arith.select %366, %362, %364 : vector<2x8x128xi1>, vector<2x8x128xf32>
      %c0_272 = arith.constant 0 : index
      %c0_273 = arith.constant 0 : index
      %c0_274 = arith.constant 0 : index
      %368 = vector.load %arg7[%c0_272, %c0_273, %c0_274] : memref<2x8x128xf32, #tpu.memory_space<vmem>>, vector<2x8x128xf32>
      tpu.vector_store %arg7[%c0_272, %c0_273, %c0_274], %367 {strides = array<i32>} : memref<2x8x128xf32, #tpu.memory_space<vmem>>, vector<2x8x128xf32>,
    } else {
    }
    return
  }
  func.func @transform_2(%arg0: i32, %arg1: memref<4x8xi32, #tpu.memory_space<smem>>, %arg2: memref<4x2xi32, #tpu.memory_space<smem>>, %arg3: memref<4x2xi32, #tpu.memory_space<smem>>, %arg4: memref<2xi32, #tpu.memory_space<smem>>) -> (i32, i32, i32) {
    %c0_i32 = arith.constant 0 : i32
    %c0_i32_0 = arith.constant 0 : i32
    %c0_i32_1 = arith.constant 0 : i32
    return %arg0, %c0_i32, %c0_i32_0 : i32, i32, i32
  }
}

</mosaic_0001>

<bundles_post_ra>
// kernel: tpu_custom_call.1
= control target key start
LH: loop header
LB: loop body
LE: loop exit
PB: predicated region body
PF: predicated region fallthrough
CT: control target
= control target key end

     0   :  { %s1945_s0 = inlined_call_operand.vmem [shape: s32[4,8], index: 0, kind: input, shape index: {}]   ;;  %s1946_s4 = inlined_call_operand.hbm [shape: f32[64,128], index: 4, kind: input, shape index: {}]   ;;  %s1947_s5 = inlined_call_operand.hbm [shape: f32[32,128], index: 5, kind: input, shape index: {}]   ;;  %s1948_s6 = inlined_call_operand.hbm [shape: f32[4,8,128], index: 6, kind: output, shape index: {}]   ;;  %s1949_s1 = inlined_call_operand.vmem [shape: s32[4,2], index: 1, kind: input, shape index: {}]   ;;  %s1950_s2 = inlined_call_operand.vmem [shape: s32[4,2], index: 2, kind: input, shape index: {}]   ;;  %s1951_s3 = inlined_call_operand.vmem [shape: s32[2], index: 3, kind: input, shape index: {}]  }
   0x1   :  { %s11_s23 = sshll.u32 %s1945_s0, 4  ;;  %s15_s26 = sshll.u32 %s1949_s1, 4  ;;  %s12_s23 = int_to_ptr.vmem [resolvable:$true] %s11_s23  ;;  %s16_s26 = int_to_ptr.vmem [resolvable:$true] %s15_s26 }
   0x2   :  { %s815_s27 = scalar_lea.vmem %s12_s23, 64  ;;  %p820_p1 = scmp.lt.s32.totalorder %s12_s23, %s12_s23 }
   0x3   :  { %p816_p0 = scmp.ne.s32.totalorder %s12_s23, %s815_s27  ;;  %p821_p2 = scmp.lt.s32.totalorder %s815_s27, %s815_s27 }
   0x5   :  { %p822_p3 = por %p821_p2, %p820_p1 }
   0x7   :  { %p823_p4 = pnand %p822_p3, %p816_p0 }
   0x9   :  { %826 = shalt.err (!%p823_p4)  }
   0xa   :  { %s1337_s28 = smov [#allocation5]   ;;  %s827_s29 = scalar_lea.vmem %s16_s26, 64 }
   0xb   :  { %14 = dma.vmem_to_smem %s12_s23, 64, %s1337_s28, [#allocation4] }
   0xc   :  { %p828_p5 = scmp.ne.s32.totalorder %s16_s26, %s827_s29  ;;  %p832_p6 = scmp.lt.s32.totalorder %s16_s26, %s16_s26 }
   0xd   :  { %p833_p7 = scmp.lt.s32.totalorder %s827_s29, %s827_s29 }
   0xf   :  { %p834_p8 = por %p833_p7, %p832_p6 }
  0x11   :  { %p835_p9 = pnand %p834_p8, %p828_p5 }
  0x13   :  { %838 = shalt.err (!%p835_p9)  }
  0x14   :  { %s1338_s0 = smov [#allocation6]   ;;  %s19_s7 = sshll.u32 %s1950_s2, 4  ;;  %s20_s7 = int_to_ptr.vmem [resolvable:$true] %s19_s7 }
  0x15   :  { %18 = dma.vmem_to_smem %s16_s26, 64, %s1338_s0, [#allocation4] }
  0x16   :  { %s23_s10 = sshll.u32 %s1951_s3, 4  ;;  %s839_s11 = scalar_lea.vmem %s20_s7, 64  ;;  %s24_s10 = int_to_ptr.vmem [resolvable:$true] %s23_s10 }
  0x17   :  { %p840_p10 = scmp.ne.s32.totalorder %s20_s7, %s839_s11  ;;  %p844_p11 = scmp.lt.s32.totalorder %s20_s7, %s20_s7 }
  0x18   :  { %p845_p12 = scmp.lt.s32.totalorder %s839_s11, %s839_s11 }
  0x1a   :  { %p846_p13 = por %p845_p12, %p844_p11 }
  0x1c   :  { %p847_p0 = pnand %p846_p13, %p840_p10 }
  0x1e   :  { %850 = shalt.err (!%p847_p0)  }
  0x1f   :  { %s1339_s12 = smov [#allocation7]   ;;  %s851_s13 = scalar_lea.vmem %s24_s10, 16 }
  0x20   :  { %22 = dma.vmem_to_smem %s20_s7, 64, %s1339_s12, [#allocation4] }
  0x21   :  { %p852_p1 = scmp.ne.s32.totalorder %s24_s10, %s851_s13  ;;  %p856_p2 = scmp.lt.s32.totalorder %s24_s10, %s24_s10 }
  0x22   :  { %p857_p3 = scmp.lt.s32.totalorder %s851_s13, %s851_s13 }
  0x24   :  { %p858_p4 = por %p857_p3, %p856_p2 }
  0x26   :  { %p859_p5 = pnand %p858_p4, %p852_p1 }
  0x28   :  { %862 = shalt.err (!%p859_p5)  }
  0x29   :  { %s1340_s2 = smov [#allocation8]  }
  0x2a   :  { %26 = dma.vmem_to_smem %s24_s10, 16, %s1340_s2, [#allocation4] }
  0x2b   :  { %1315 = dma.done.wait [#allocation4], 208 }
  0x2c   :  { %1316 = vsyncadd [#allocation4], 4294967088 }
  0x2d   :  { %28 = sfence }
  0x2e   :  { %29 = vsyncpa [#allocation10], 0 }
  0x2f   :  { %31 = vsyncpa [#allocation10 + $0x1], 0  ;;  %s1393_s3 = smov 0   ;;  %s1395_s14 = smov 0  }
  0x30   :  { %s1397_s15 = smov 0  }
  0x31 LB: > { %s713_s16 = sadd.s32 4294967295, %s1335_s15   ;;  %s1410_s17 = sadd.s32 1, %s1335_s15   ;;  %s1335_s15 = sphi %s1397_s15, %s1983_s15   ;;  %s1331_s14 = sphi %s1395_s14, %s1986_s14   ;;  %s1327_s3 = sphi %s1393_s3, %s1985_s3  }
  0x32   : > { %1958 = sst [smem:[#allocation51_spill]] %s1410_s17  ;;  %s40_s18 = ssub.s32 %s1335_s15, %s1410_s17 }
  0x33   : > { %s43_s19 = sadd.s32 1, %s1331_s14  ;;  %p41_p6 = scmp.eq.s32.totalorder %s40_s18, 0 }
  0x34   : > { %p714_p7 = scmp.ne.s32.totalorder %s40_s18, 0  ;;  %p47_p8 = scmp.eq.s32.totalorder %s1335_s15, 1 }
  0x35   : > { %p52_p9 = scmp.ne.s32.totalorder %s1331_s14, %s1327_s3  ;;  %p53_p11 = scmp.eq.s32.totalorder %s713_s16, 1 }
  0x36   : > { %s1419_s20 = scalar_select %p41_p6, %s1331_s14, %s43_s19  }
  0x37   : > { %p1421_p10 = por %p714_p7, %p47_p8  ;;  %p1425_p12 = por %p53_p11, %p52_p9 }
  0x38   : > { %1959 = sst [smem:[#allocation52_spill]] %s1419_s20  ;;  %p715_p13 = scmp.ge.s32.totalorder %s1335_s15, 2 }
  0x39   : > { %s1960_s21 = scalar_select %p1421_p10, 1, 0 }
  0x3a   : > { %s1961_s22 = scalar_select %p1425_p12, 1, 0 }
  0x3b   : > { %62 = sbr.rel (%p715_p13) target bundleno = 719 (0x2cf), region = 12  ;;  %s1952_s23 = sand.u32 (!%p715_p13), 1, %s1331_s14   ;;  %v348_v0 = vlaneseq (!%p715_p13) }
  0x3c   : > { %1962 = sst [smem:[#allocation53_spill]] %s1961_s22  ;;  %s1432_s24 = sshll.u32 (!%p715_p13), %s1335_s15, 8 }
  0x3d   : > { %s716_s25 = sshll.u32 (!%p715_p13), %s1952_s23, 4  ;;  %s73_s26 = sld [smem:[#allocation5 + %s1432_s24]] (!%p715_p13) }
  0x3e   : > { %s87_s27 = sadd.s32 (!%p715_p13), 1, %s1432_s24  ;;  %s1438_s28 = scalar_lea.vmem (!%p715_p13), [#allocation9], %s716_s25 }
  0x3f   : > { %s83_s29 = sshll.u32 (!%p715_p13), %s1438_s28, 4  ;;  %s1441_s0 = sld [smem:[#allocation5 + %s87_s27]] (!%p715_p13)  ;;  %s1443_s29 = int_to_ptr.vmem [resolvable:$true] %s83_s29 }
  0x40   : > { %s91_s1 = scalar_lea.vmem (!%p715_p13), %s1438_s28, 1 [#allocation9]  ;;  %s1447_s7 = sld [smem:[#allocation6 + %s1432_s24]] (!%p715_p13) }
  0x41   : > { %s99_s30 = sshll.u32 (!%p715_p13), %s91_s1, 4  ;;  %s1452_s8 = sld [smem:[#allocation7 + %s1432_s24]] (!%p715_p13)  ;;  %s1449_s30 = int_to_ptr.vmem [resolvable:$true] %s99_s30 }
  0x42   : > { %s1454_s10 = sld [smem:[#allocation6 + %s87_s27]]  ;;  %s1464_s25 = scalar_lea.hbm %s1946_s4, 1024 }
  0x43   : > { %s719_s9 = sshll.u32 %s73_s26, 4  ;;  %s1459_s2 = sld [smem:[#allocation7 + %s87_s27]] }
  0x44   : > { %s75_s13 = scalar_lea.hbm %s1946_s4, %s719_s9 }
  0x45   : > { %s863_s16 = scalar_lea.hbm %s75_s13, 16  ;;  %p866_p1 = scmp.lt.u32.totalorder %s75_s13, %s1946_s4 }
  0x46   : > { %p864_p0 = scmp.ne.s32.totalorder %s75_s13, %s863_s16  ;;  %p867_p2 = scmp.lt.u32.totalorder %s1464_s25, %s863_s16 }
  0x47   : > { %p869_p4 = scmp.lt.u32.totalorder %s863_s16, %s75_s13 }
  0x48   : > { %p868_p3 = por %p867_p2, %p866_p1 }
  0x4a   : > { %p870_p5 = por %p869_p4, %p868_p3 }
  0x4c   : > { %p871_p6 = pnand %p870_p5, %p864_p0 }
  0x4e   : > { %874 = shalt.err (!%p871_p6)  }
  0x4f   : > { %s875_s26 = scalar_lea.vmem %s1443_s29, 16  ;;  %s1341_s27 = smov [#allocation9]  }
  0x50   : > { %p876_p7 = scmp.ne.s32.totalorder %s1443_s29, %s875_s26  ;;  %s877_s9 = sshll.u32 %s1341_s27, 4  ;;  %s1472_s9 = int_to_ptr.vmem [resolvable:$false] %s877_s9 }
  0x51   : > { %s1475_s23 = scalar_lea.vmem %s1472_s9, 512  ;;  %p1953_p8 = scmp.lt.s32.totalorder %s1443_s29, %s1472_s9 }
  0x52   : > { %p881_p9 = scmp.lt.s32.totalorder %s1475_s23, %s875_s26 }
  0x54   : > { %p882_p11 = por %p881_p9, %p1953_p8 }
  0x56   : > { %p883_p13 = pnand %p882_p11, %p876_p7 }
  0x58   : > { %886 = shalt.err (!%p883_p13)  }
  0x59   : > { %86 = dma.hbm_to_vmem [thread:$0]  %s75_s13, 16, %s1443_s29, [#allocation3] }
  0x5a   : > { %s720_s11 = sshll.u32 %s1441_s0, 4  ;;  %s103_s12 = sadd.s32 2, %s1432_s24 }
  0x5b   : > { %s90_s19 = scalar_lea.hbm %s1946_s4, %s720_s11  ;;  %s359_s1 = ssub.s32 7, %s1447_s7 }
  0x5c   : > { %s887_s27 = scalar_lea.hbm %s90_s19, 16  ;;  %p890_p1 = scmp.lt.u32.totalorder %s90_s19, %s1946_s4 }
  0x5d   : > { %p888_p0 = scmp.ne.s32.totalorder %s90_s19, %s887_s27  ;;  %p891_p2 = scmp.lt.u32.totalorder %s1464_s25, %s887_s27 }
  0x5e   : > { %p893_p4 = scmp.lt.u32.totalorder %s887_s27, %s90_s19 }
  0x5f   : > { %p892_p3 = por %p891_p2, %p890_p1 }
  0x61   : > { %p894_p5 = por %p893_p4, %p892_p3 }
  0x63   : > { %p895_p6 = pnand %p894_p5, %p888_p0 }
  0x65   : > { %898 = shalt.err (!%p895_p6)  }
  0x66   : > { %s899_s0 = scalar_lea.vmem %s1449_s30, 16  ;;  %p904_p9 = scmp.lt.s32.totalorder %s1449_s30, %s1472_s9 }
  0x67   : > { %p900_p7 = scmp.ne.s32.totalorder %s1449_s30, %s899_s0  ;;  %p905_p11 = scmp.lt.s32.totalorder %s1475_s23, %s899_s0 }
  0x69   : > { %p906_p13 = por %p905_p11, %p904_p9 }
  0x6b   : > { %p907_p8 = pnand %p906_p13, %p900_p7 }
  0x6d   : > { %910 = shalt.err (!%p907_p8)  }
  0x6e   : > { %102 = dma.hbm_to_vmem [thread:$0]  %s90_s19, 16, %s1449_s30, [#allocation3]  ;;  %v1501_v1 = vshrl.u32 %v348_v0, 7  ;;  %v1527_v11 = vand.u32 127, %v348_v0 }
  0x6f   : > { %p360_p0 = scmp.lt.s32.totalorder %s359_s1, %s1452_s8  ;;  %s364_s20 = sadd.s32 1, %s1447_s7 }
  0x70   : > { %v365_v2 = vstv %s364_s20  ;;  %s381_s13 = ssub.s32 7, %s1454_s10  ;;  %s386_s11 = sadd.s32 1, %s1454_s10 }
  0x71   : > { %s1988_s1 = smov (!%p360_p0, %s359_s1), %s1452_s8  ;;  %v366_v3 = vsub.s32 %v1501_v1, %v365_v2  ;;  %p382_p8 = scmp.lt.s32.totalorder %s381_s13, %s1459_s2  ;;  %v387_v4 = vstv %s386_s11 }
  0x72   : > { %s104_s16 = sld [smem:[#allocation5 + %s103_s12]]  ;;  %p362_p1 = scmp.lt.s32.totalorder %s1988_s1, 4  ;;  %v388_v5 = vsub.s32 %v1501_v1, %v387_v4 }
  0x73   : > { %s107_s18 = scalar_lea.vmem %s1438_s28, 2 [#allocation9]  ;;  %s1990_s13 = smov (!%p382_p8, %s381_s13), %s1459_s2  ;;  %vm368_vm0 = vcmp.ge.s32.totalorder %v366_v3, 0 }
  0x74   : > { %s1992_s1 = smov (!%p362_p1, %s1988_s1), 4  ;;  %p384_p2 = scmp.lt.s32.totalorder %s1990_s13, 4  ;;  %vm390_vm3 = vcmp.ge.s32.totalorder %v388_v5, 0  ;;  %v399_v8 = vadd.s32 4, %v388_v5 }
  0x75   : > { %s115_s30 = sshll.u32 %s107_s18, 4  ;;  %v372_v6 = vstv %s1992_s1  ;;  %s119_s7 = sadd.s32 3, %s1432_s24  ;;  %s1515_s30 = int_to_ptr.vmem [resolvable:$true] %s115_s30 }
  0x76   : > { %vm373_vm1 = vcmp.lt.s32.totalorder %v366_v3, %v372_v6  ;;  %s1994_s13 = smov (!%p384_p2, %s1990_s13), 4  ;;  %s1522_s10 = sld [smem:[#allocation5 + %s119_s7]] }
  0x77   : > { %vm1518_vm2 = vmand %vm368_vm0, %vm373_vm1  ;;  %v394_v10 = vstv %s1994_s13  ;;  %s123_s1 = scalar_lea.vmem %s1438_s28, 3 [#allocation9] }
  0x78   : > { %s721_s8 = sshll.u32 %s104_s16, 4  ;;  %v377_v9 = vsel %vm1518_vm2, %v366_v3, 0  ;;  %vm1533_vm4 = vcmp.lt.s32.totalorder %v388_v5, %v394_v10 }
  0x79   : > { %s106_s19 = scalar_lea.hbm %s1946_s4, %s721_s8 }
  0x7a   : > { %s911_s27 = scalar_lea.hbm %s106_s19, 16  ;;  %p914_p4 = scmp.lt.u32.totalorder %s106_s19, %s1946_s4 }
  0x7b   : > { %p912_p3 = scmp.ne.s32.totalorder %s106_s19, %s911_s27  ;;  %p915_p5 = scmp.lt.u32.totalorder %s1464_s25, %s911_s27 }
  0x7c   : > { %p917_p7 = scmp.lt.u32.totalorder %s911_s27, %s106_s19 }
  0x7d   : > { %p916_p6 = por %p915_p5, %p914_p4 }
  0x7f   : > { %p918_p9 = por %p917_p7, %p916_p6 }
  0x81   : > { %p919_p11 = pnand %p918_p9, %p912_p3 }
  0x83   : > { %922 = shalt.err (!%p919_p11)  }
  0x84   : > { %s923_s20 = scalar_lea.vmem %s1515_s30, 16  ;;  %p928_p0 = scmp.lt.s32.totalorder %s1515_s30, %s1472_s9 }
  0x85   : > { %p924_p13 = scmp.ne.s32.totalorder %s1515_s30, %s923_s20  ;;  %p929_p8 = scmp.lt.s32.totalorder %s1475_s23, %s923_s20 }
  0x87   : > { %p930_p1 = por %p929_p8, %p928_p0 }
  0x89   : > { %p931_p2 = pnand %p930_p1, %p924_p13 }
  0x8b   : > { %934 = shalt.err (!%p931_p2)  }
  0x8c   : > { %118 = dma.hbm_to_vmem [thread:$0]  %s106_s19, 16, %s1515_s30, [#allocation3]  ;;  %vm1550_vm5 = vmand %vm390_vm3, %vm1533_vm4 }
  0x8d   : > { %s131_s13 = sshll.u32 %s123_s1, 4  ;;  %s135_s11 = sadd.s32 4, %s1432_s24  ;;  %v401_v14 = vsel %vm1550_vm5, %v399_v8, %v377_v9  ;;  %vm403_vm6 = vmor %vm1518_vm2, %vm1550_vm5  ;;  %s132_s13 = int_to_ptr.vmem [resolvable:$true] %s131_s13 }
  0x8e   : > { %s1561_s16 = sld [smem:[#allocation5 + %s135_s11]]  ;;  %vm463_vm7 = vcmp.eq.s32.totalorder %v401_v14, %v1527_v11  ;;  %s139_s18 = scalar_lea.vmem %s1438_s28, 4 [#allocation9] }
  0x8f   : > { %s151_s30 = sadd.s32 5, %s1432_s24  ;;  %vm1571_vm8 = vmand %vm463_vm7, %vm403_vm6  ;;  %s722_s7 = sshll.u32 %s1522_s10, 4 }
  0x90   : > { %s147_s8 = sshll.u32 %s139_s18, 4  ;;  %s122_s19 = scalar_lea.hbm %s1946_s4, %s722_s7  ;;  %s1579_s8 = int_to_ptr.vmem [resolvable:$true] %s147_s8 }
  0x91   : > { %s935_s1 = scalar_lea.hbm %s122_s19, 16  ;;  %p938_p4 = scmp.lt.u32.totalorder %s122_s19, %s1946_s4 }
  0x92   : > { %p936_p3 = scmp.ne.s32.totalorder %s122_s19, %s935_s1  ;;  %p939_p5 = scmp.lt.u32.totalorder %s1464_s25, %s935_s1 }
  0x93   : > { %p941_p7 = scmp.lt.u32.totalorder %s935_s1, %s122_s19 }
  0x94   : > { %p940_p6 = por %p939_p5, %p938_p4 }
  0x96   : > { %p942_p9 = por %p941_p7, %p940_p6 }
  0x98   : > { %p943_p11 = pnand %p942_p9, %p936_p3 }
  0x9a   : > { %946 = shalt.err (!%p943_p11)  }
  0x9b   : > { %s947_s10 = scalar_lea.vmem %s132_s13, 16  ;;  %p952_p0 = scmp.lt.s32.totalorder %s132_s13, %s1472_s9 }
  0x9c   : > { %p948_p13 = scmp.ne.s32.totalorder %s132_s13, %s947_s10  ;;  %p953_p8 = scmp.lt.s32.totalorder %s1475_s23, %s947_s10 }
  0x9e   : > { %p954_p1 = por %p953_p8, %p952_p0 }
  0xa0   : > { %p955_p2 = pnand %p954_p1, %p948_p13 }
  0xa2   : > { %958 = shalt.err (!%p955_p2)  }
  0xa3   : > { %134 = dma.hbm_to_vmem [thread:$0]  %s122_s19, 16, %s132_s13, [#allocation3] }
  0xa4   : > { %s1587_s0 = sld [smem:[#allocation5 + %s151_s30]]  ;;  %s155_s20 = scalar_lea.vmem %s1438_s28, 5 [#allocation9] }
  0xa5   : > { %s723_s11 = sshll.u32 %s1561_s16, 4  ;;  %s163_s18 = sshll.u32 %s155_s20, 4  ;;  %s1594_s18 = int_to_ptr.vmem [resolvable:$true] %s163_s18 }
  0xa6   : > { %s138_s12 = scalar_lea.hbm %s1946_s4, %s723_s11 }
  0xa7   : > { %s959_s1 = scalar_lea.hbm %s138_s12, 16  ;;  %p962_p4 = scmp.lt.u32.totalorder %s138_s12, %s1946_s4 }
  0xa8   : > { %p960_p3 = scmp.ne.s32.totalorder %s138_s12, %s959_s1  ;;  %p963_p5 = scmp.lt.u32.totalorder %s1464_s25, %s959_s1 }
  0xa9   : > { %p965_p7 = scmp.lt.u32.totalorder %s959_s1, %s138_s12 }
  0xaa   : > { %p964_p6 = por %p963_p5, %p962_p4 }
  0xac   : > { %p966_p9 = por %p965_p7, %p964_p6 }
  0xae   : > { %p967_p11 = pnand %p966_p9, %p960_p3 }
  0xb0   : > { %970 = shalt.err (!%p967_p11)  }
  0xb1   : > { %s971_s13 = scalar_lea.vmem %s1579_s8, 16  ;;  %p976_p0 = scmp.lt.s32.totalorder %s1579_s8, %s1472_s9 }
  0xb2   : > { %p972_p13 = scmp.ne.s32.totalorder %s1579_s8, %s971_s13  ;;  %p977_p8 = scmp.lt.s32.totalorder %s1475_s23, %s971_s13 }
  0xb4   : > { %p978_p1 = por %p977_p8, %p976_p0 }
  0xb6   : > { %p979_p2 = pnand %p978_p1, %p972_p13 }
  0xb8   : > { %982 = shalt.err (!%p979_p2)  }
  0xb9   : > { %150 = dma.hbm_to_vmem [thread:$0]  %s138_s12, 16, %s1579_s8, [#allocation3] }
  0xba   : > { %s167_s16 = sadd.s32 6, %s1432_s24  ;;  %s171_s30 = scalar_lea.vmem %s1438_s28, 6 [#allocation9] }
  0xbb   : > { %s1608_s19 = sld [smem:[#allocation5 + %s167_s16]]  ;;  %s179_s10 = sshll.u32 %s171_s30, 4  ;;  %s1611_s10 = int_to_ptr.vmem [resolvable:$true] %s179_s10 }
  0xbc   : > { %s724_s20 = sshll.u32 %s1587_s0, 4  ;;  %s183_s1 = sadd.s32 7, %s1432_s24 }
  0xbd   : > { %s154_s2 = scalar_lea.hbm %s1946_s4, %s724_s20 }
  0xbe   : > { %s983_s27 = scalar_lea.hbm %s154_s2, 16  ;;  %p986_p4 = scmp.lt.u32.totalorder %s154_s2, %s1946_s4 }
  0xbf   : > { %p984_p3 = scmp.ne.s32.totalorder %s154_s2, %s983_s27  ;;  %p987_p5 = scmp.lt.u32.totalorder %s1464_s25, %s983_s27 }
  0xc0   : > { %p989_p7 = scmp.lt.u32.totalorder %s983_s27, %s154_s2 }
  0xc1   : > { %p988_p6 = por %p987_p5, %p986_p4 }
  0xc3   : > { %p990_p9 = por %p989_p7, %p988_p6 }
  0xc5   : > { %p991_p11 = pnand %p990_p9, %p984_p3 }
  0xc7   : > { %994 = shalt.err (!%p991_p11)  }
  0xc8   : > { %s995_s8 = scalar_lea.vmem %s1594_s18, 16  ;;  %p1000_p0 = scmp.lt.s32.totalorder %s1594_s18, %s1472_s9 }
  0xc9   : > { %p996_p13 = scmp.ne.s32.totalorder %s1594_s18, %s995_s8  ;;  %p1001_p8 = scmp.lt.s32.totalorder %s1475_s23, %s995_s8 }
  0xcb   : > { %p1002_p1 = por %p1001_p8, %p1000_p0 }
  0xcd   : > { %p1003_p2 = pnand %p1002_p1, %p996_p13 }
  0xcf   : > { %1006 = shalt.err (!%p1003_p2)  }
  0xd0   : > { %166 = dma.hbm_to_vmem [thread:$0]  %s154_s2, 16, %s1594_s18, [#allocation3] }
  0xd1   : > { %s1627_s0 = sld [smem:[#allocation5 + %s183_s1]]  ;;  %s187_s12 = scalar_lea.vmem %s1438_s28, 7 [#allocation9] }
  0xd2   : > { %s195_s16 = sshll.u32 %s187_s12, 4  ;;  %s1631_s30 = sadd.s32 128, %s1432_s24  ;;  %s1634_s16 = int_to_ptr.vmem [resolvable:$true] %s195_s16 }
  0xd3   : > { %s725_s20 = sshll.u32 %s1608_s19, 4  ;;  %s1640_s26 = sld [smem:[#allocation5 + %s1631_s30]] }
  0xd4   : > { %s170_s27 = scalar_lea.hbm %s1946_s4, %s725_s20 }
  0xd5   : > { %s1007_s13 = scalar_lea.hbm %s170_s27, 16  ;;  %p1010_p4 = scmp.lt.u32.totalorder %s170_s27, %s1946_s4 }
  0xd6   : > { %p1008_p3 = scmp.ne.s32.totalorder %s170_s27, %s1007_s13  ;;  %p1011_p5 = scmp.lt.u32.totalorder %s1464_s25, %s1007_s13 }
  0xd7   : > { %p1013_p7 = scmp.lt.u32.totalorder %s1007_s13, %s170_s27 }
  0xd8   : > { %p1012_p6 = por %p1011_p5, %p1010_p4 }
  0xda   : > { %p1014_p9 = por %p1013_p7, %p1012_p6 }
  0xdc   : > { %p1015_p11 = pnand %p1014_p9, %p1008_p3 }
  0xde   : > { %1018 = shalt.err (!%p1015_p11)  }
  0xdf   : > { %s1019_s19 = scalar_lea.vmem %s1611_s10, 16  ;;  %p1024_p0 = scmp.lt.s32.totalorder %s1611_s10, %s1472_s9 }
  0xe0   : > { %p1020_p13 = scmp.ne.s32.totalorder %s1611_s10, %s1019_s19  ;;  %p1025_p8 = scmp.lt.s32.totalorder %s1475_s23, %s1019_s19 }
  0xe2   : > { %p1026_p1 = por %p1025_p8, %p1024_p0 }
  0xe4   : > { %p1027_p2 = pnand %p1026_p1, %p1020_p13 }
  0xe6   : > { %1030 = shalt.err (!%p1027_p2)  }
  0xe7   : > { %182 = dma.hbm_to_vmem [thread:$0]  %s170_s27, 16, %s1611_s10, [#allocation3] }
  0xe8   : > { %s204_s2 = scalar_lea.vmem %s1438_s28, 8 [#allocation9]  ;;  %s1654_s1 = sadd.s32 1, %s1631_s30 }
  0xe9   : > { %s726_s12 = sshll.u32 %s1627_s0, 4  ;;  %s212_s20 = sshll.u32 %s204_s2, 4  ;;  %s1660_s20 = int_to_ptr.vmem [resolvable:$true] %s212_s20 }
  0xea   : > { %s186_s13 = scalar_lea.hbm %s1946_s4, %s726_s12 }
  0xeb   : > { %s1031_s8 = scalar_lea.hbm %s186_s13, 16  ;;  %p1034_p4 = scmp.lt.u32.totalorder %s186_s13, %s1946_s4 }
  0xec   : > { %p1032_p3 = scmp.ne.s32.totalorder %s186_s13, %s1031_s8  ;;  %p1035_p5 = scmp.lt.u32.totalorder %s1464_s25, %s1031_s8 }
  0xed   : > { %p1037_p7 = scmp.lt.u32.totalorder %s1031_s8, %s186_s13 }
  0xee   : > { %p1036_p6 = por %p1035_p5, %p1034_p4 }
  0xf0   : > { %p1038_p9 = por %p1037_p7, %p1036_p6 }
  0xf2   : > { %p1039_p11 = pnand %p1038_p9, %p1032_p3 }
  0xf4   : > { %1042 = shalt.err (!%p1039_p11)  }
  0xf5   : > { %s1043_s10 = scalar_lea.vmem %s1634_s16, 16  ;;  %p1048_p0 = scmp.lt.s32.totalorder %s1634_s16, %s1472_s9 }
  0xf6   : > { %p1044_p13 = scmp.ne.s32.totalorder %s1634_s16, %s1043_s10  ;;  %p1049_p8 = scmp.lt.s32.totalorder %s1475_s23, %s1043_s10 }
  0xf8   : > { %p1050_p1 = por %p1049_p8, %p1048_p0 }
  0xfa   : > { %p1051_p2 = pnand %p1050_p1, %p1044_p13 }
  0xfc   : > { %1054 = shalt.err (!%p1051_p2)  }
  0xfd   : > { %198 = dma.hbm_to_vmem [thread:$0]  %s186_s13, 16, %s1634_s16, [#allocation3] }
  0xfe   : > { %s728_s0 = sshll.u32 %s1640_s26, 4  ;;  %s1674_s27 = sld [smem:[#allocation5 + %s1654_s1]] }
  0xff   : > { %s203_s11 = scalar_lea.hbm %s1946_s4, %s728_s0  ;;  %s220_s7 = scalar_lea.vmem %s1438_s28, 9 [#allocation9] }
 0x100   : > { %s1055_s8 = scalar_lea.hbm %s203_s11, 16  ;;  %p1058_p4 = scmp.lt.u32.totalorder %s203_s11, %s1946_s4 }
 0x101   : > { %p1056_p3 = scmp.ne.s32.totalorder %s203_s11, %s1055_s8  ;;  %p1059_p5 = scmp.lt.u32.totalorder %s1464_s25, %s1055_s8 }
 0x102   : > { %p1061_p7 = scmp.lt.u32.totalorder %s1055_s8, %s203_s11 }
 0x103   : > { %p1060_p6 = por %p1059_p5, %p1058_p4 }
 0x105   : > { %p1062_p9 = por %p1061_p7, %p1060_p6 }
 0x107   : > { %p1063_p11 = pnand %p1062_p9, %p1056_p3 }
 0x109   : > { %1066 = shalt.err (!%p1063_p11)  }
 0x10a   : > { %s1067_s16 = scalar_lea.vmem %s1660_s20, 16  ;;  %p1072_p0 = scmp.lt.s32.totalorder %s1660_s20, %s1472_s9 }
 0x10b   : > { %p1068_p13 = scmp.ne.s32.totalorder %s1660_s20, %s1067_s16  ;;  %p1073_p8 = scmp.lt.s32.totalorder %s1475_s23, %s1067_s16 }
 0x10d   : > { %p1074_p1 = por %p1073_p8, %p1072_p0 }
 0x10f   : > { %p1075_p2 = pnand %p1074_p1, %p1068_p13 }
 0x111   : > { %1078 = shalt.err (!%p1075_p2)  }
 0x112   : > { %215 = dma.hbm_to_vmem [thread:$0]  %s203_s11, 16, %s1660_s20, [#allocation3] }
 0x113   : > { %s228_s26 = sshll.u32 %s220_s7, 4  ;;  %s1691_s13 = sld [smem:[#allocation6 + %s1631_s30]]  ;;  %s229_s26 = int_to_ptr.vmem [resolvable:$true] %s228_s26 }
 0x114   : > { %s1694_s10 = sld [smem:[#allocation7 + %s1631_s30]]  ;;  %s729_s12 = sshll.u32 %s1674_s27, 4 }
 0x115   : > { %s1697_s0 = sld [smem:[#allocation6 + %s1654_s1]]  ;;  %s232_s8 = sadd.s32 2, %s1631_s30 }
 0x116   : > { %s1700_s2 = sld [smem:[#allocation7 + %s1654_s1]]  ;;  %s219_s16 = scalar_lea.hbm %s1946_s4, %s729_s12 }
 0x117   : > { %s1707_s17 = sld [smem:[#allocation5 + %s232_s8]]  ;;  %s1079_s22 = scalar_lea.hbm %s219_s16, 16 }
 0x118   : > { %p1080_p3 = scmp.ne.s32.totalorder %s219_s16, %s1079_s22  ;;  %p1082_p4 = scmp.lt.u32.totalorder %s219_s16, %s1946_s4 }
 0x119   : > { %p1083_p5 = scmp.lt.u32.totalorder %s1464_s25, %s1079_s22  ;;  %p1085_p7 = scmp.lt.u32.totalorder %s1079_s22, %s219_s16 }
 0x11b   : > { %p1084_p6 = por %p1083_p5, %p1082_p4 }
 0x11d   : > { %p1086_p9 = por %p1085_p7, %p1084_p6 }
 0x11f   : > { %p1087_p11 = pnand %p1086_p9, %p1080_p3 }
 0x121   : > { %1090 = shalt.err (!%p1087_p11)  }
 0x122   : > { %s1091_s1 = scalar_lea.vmem %s229_s26, 16  ;;  %p1096_p0 = scmp.lt.s32.totalorder %s229_s26, %s1472_s9 }
 0x123   : > { %p1092_p13 = scmp.ne.s32.totalorder %s229_s26, %s1091_s1  ;;  %p1097_p8 = scmp.lt.s32.totalorder %s1475_s23, %s1091_s1 }
 0x125   : > { %p1098_p1 = por %p1097_p8, %p1096_p0 }
 0x127   : > { %p1099_p2 = pnand %p1098_p1, %p1092_p13 }
 0x129   : > { %1102 = shalt.err (!%p1099_p2)  }
 0x12a   : > { %231 = dma.hbm_to_vmem [thread:$0]  %s219_s16, 16, %s229_s26, [#allocation3] }
 0x12b   : > { %s411_s22 = ssub.s32 7, %s1691_s13  ;;  %s416_s27 = sadd.s32 1, %s1691_s13 }
 0x12c   : > { %p412_p3 = scmp.lt.s32.totalorder %s411_s22, %s1694_s10  ;;  %v417_v16 = vstv %s416_s27  ;;  %s236_s7 = scalar_lea.vmem %s1438_s28, 10 [#allocation9] }
 0x12d   : > { %s437_s12 = ssub.s32 7, %s1697_s0  ;;  %s442_s8 = sadd.s32 1, %s1697_s0  ;;  %v419_v17 = vsub.s32 %v1501_v1, %v417_v16 }
 0x12e   : > { %s1996_s22 = smov (!%p412_p3, %s411_s22), %s1694_s10  ;;  %p438_p4 = scmp.lt.s32.totalorder %s437_s12, %s1700_s2  ;;  %v443_v18 = vstv %s442_s8 }
 0x12f   : > { %s730_s26 = sshll.u32 %s1707_s17, 4  ;;  %p414_p5 = scmp.lt.s32.totalorder %s1996_s22, 4  ;;  %v445_v19 = vsub.s32 %v1501_v1, %v443_v18  ;;  %vm421_vm9 = vcmp.ge.s32.totalorder %v419_v17, 0  ;;  %v430_v20 = vadd.s32 8, %v419_v17 }
 0x130   : > { %s1728_s16 = scalar_lea.hbm %s1946_s4, %s730_s26  ;;  %s1998_s12 = smov (!%p438_p4, %s437_s12), %s1700_s2 }
 0x131   : > { %s2000_s22 = smov (!%p414_p5, %s1996_s22), 4  ;;  %p440_p6 = scmp.lt.s32.totalorder %s1998_s12, 4  ;;  %vm447_vm12 = vcmp.ge.s32.totalorder %v445_v19, 0  ;;  %v456_v23 = vadd.s32 12, %v445_v19 }
 0x132   : > { %s244_s13 = sshll.u32 %s236_s7, 4  ;;  %v424_v21 = vstv %s2000_s22  ;;  %s248_s17 = sadd.s32 3, %s1631_s30  ;;  %s245_s13 = int_to_ptr.vmem [resolvable:$true] %s244_s13 }
 0x133   : > { %vm426_vm10 = vcmp.lt.s32.totalorder %v419_v17, %v424_v21  ;;  %s2002_s12 = smov (!%p440_p6, %s1998_s12), 4  ;;  %s1103_s10 = scalar_lea.hbm %s1728_s16, 16 }
 0x134   : > { %vm1733_vm11 = vmand %vm421_vm9, %vm426_vm10  ;;  %p1104_p7 = scmp.ne.s32.totalorder %s1728_s16, %s1103_s10  ;;  %p1106_p9 = scmp.lt.u32.totalorder %s1728_s16, %s1946_s4 }
 0x135   : > { %p1107_p11 = scmp.lt.u32.totalorder %s1464_s25, %s1103_s10  ;;  %p1109_p0 = scmp.lt.u32.totalorder %s1103_s10, %s1728_s16 }
 0x137   : > { %p1108_p13 = por %p1107_p11, %p1106_p9 }
 0x139   : > { %p1110_p8 = por %p1109_p0, %p1108_p13 }
 0x13b   : > { %p1111_p1 = pnand %p1110_p8, %p1104_p7 }
 0x13d   : > { %1114 = shalt.err (!%p1111_p1)  }
 0x13e   : > { %s1115_s20 = scalar_lea.vmem %s245_s13, 16  ;;  %p1120_p3 = scmp.lt.s32.totalorder %s245_s13, %s1472_s9 }
 0x13f   : > { %p1116_p2 = scmp.ne.s32.totalorder %s245_s13, %s1115_s20  ;;  %p1121_p4 = scmp.lt.s32.totalorder %s1475_s23, %s1115_s20 }
 0x141   : > { %p1122_p5 = por %p1121_p4, %p1120_p3 }
 0x143   : > { %p1123_p6 = pnand %p1122_p5, %p1116_p2 }
 0x145   : > { %1126 = shalt.err (!%p1123_p6)  }
 0x146   : > { %247 = dma.hbm_to_vmem [thread:$0]  %s1728_s16, 16, %s245_s13, [#allocation3]  ;;  %v432_v24 = vsel %vm1733_vm11, %v430_v20, 0  ;;  %v450_v25 = vstv %s2002_s12 }
 0x147   : > { %s249_s11 = sld [smem:[#allocation5 + %s248_s17]]  ;;  %s252_s1 = scalar_lea.vmem %s1438_s28, 11 [#allocation9]  ;;  %vm452_vm13 = vcmp.lt.s32.totalorder %v445_v19, %v450_v25 }
 0x148   : > { %s260_s22 = sshll.u32 %s252_s1, 4  ;;  %s264_s27 = sadd.s32 4, %s1631_s30  ;;  %vm1753_vm14 = vmand %vm447_vm12, %vm452_vm13  ;;  %s1757_s22 = int_to_ptr.vmem [resolvable:$true] %s260_s22 }
 0x149   : > { %s1759_s7 = sld [smem:[#allocation5 + %s264_s27]]  ;;  %v458_v27 = vsel %vm1753_vm14, %v456_v23, %v432_v24  ;;  %vm460_vm15 = vmor %vm1733_vm11, %vm1753_vm14  ;;  %s268_s12 = scalar_lea.vmem %s1438_s28, 12 [#allocation9] }
 0x14a   : > { %s280_s8 = sadd.s32 5, %s1631_s30  ;;  %vm464_vm0 = vcmp.eq.s32.totalorder %v458_v27, %v1527_v11  ;;  %s276_s26 = sshll.u32 %s268_s12, 4  ;;  %s1781_s26 = int_to_ptr.vmem [resolvable:$true] %s276_s26 }
 0x14b   : > { %s1770_s18 = sld [smem:[#allocation5 + %s280_s8]]  ;;  %vm1777_vm1 = vmand %vm464_vm0, %vm460_vm15  ;;  %s284_s19 = scalar_lea.vmem %s1438_s28, 13 [#allocation9] }
 0x14c   : > { %s292_s13 = sshll.u32 %s284_s19, 4  ;;  %s1787_s13 = int_to_ptr.vmem [resolvable:$true] %s292_s13 }
 0x14d   : > { %s731_s16 = sshll.u32 %s249_s11, 4 }
 0x14e   : > { %s251_s0 = scalar_lea.hbm %s1946_s4, %s731_s16 }
 0x14f   : > { %s1127_s2 = scalar_lea.hbm %s251_s0, 16  ;;  %p1130_p9 = scmp.lt.u32.totalorder %s251_s0, %s1946_s4 }
 0x150   : > { %p1128_p7 = scmp.ne.s32.totalorder %s251_s0, %s1127_s2  ;;  %p1131_p11 = scmp.lt.u32.totalorder %s1464_s25, %s1127_s2 }
 0x151   : > { %p1133_p0 = scmp.lt.u32.totalorder %s1127_s2, %s251_s0 }
 0x152   : > { %p1132_p13 = por %p1131_p11, %p1130_p9 }
 0x154   : > { %p1134_p8 = por %p1133_p0, %p1132_p13 }
 0x156   : > { %p1135_p1 = pnand %p1134_p8, %p1128_p7 }
 0x158   : > { %1138 = shalt.err (!%p1135_p1)  }
 0x159   : > { %s1139_s11 = scalar_lea.vmem %s1757_s22, 16  ;;  %p1144_p3 = scmp.lt.s32.totalorder %s1757_s22, %s1472_s9 }
 0x15a   : > { %p1140_p2 = scmp.ne.s32.totalorder %s1757_s22, %s1139_s11  ;;  %p1145_p4 = scmp.lt.s32.totalorder %s1475_s23, %s1139_s11 }
 0x15c   : > { %p1146_p5 = por %p1145_p4, %p1144_p3 }
 0x15e   : > { %p1147_p6 = pnand %p1146_p5, %p1140_p2 }
 0x160   : > { %1150 = shalt.err (!%p1147_p6)  }
 0x161   : > { %263 = dma.hbm_to_vmem [thread:$0]  %s251_s0, 16, %s1757_s22, [#allocation3] }
 0x162   : > { %s732_s27 = sshll.u32 %s1759_s7, 4  ;;  %s296_s12 = sadd.s32 6, %s1631_s30 }
 0x163   : > { %s267_s16 = scalar_lea.hbm %s1946_s4, %s732_s27  ;;  %s733_s17 = sshll.u32 %s1770_s18, 4 }
 0x164   : > { %s1151_s10 = scalar_lea.hbm %s267_s16, 16  ;;  %p1154_p9 = scmp.lt.u32.totalorder %s267_s16, %s1946_s4 }
 0x165   : > { %p1152_p7 = scmp.ne.s32.totalorder %s267_s16, %s1151_s10  ;;  %p1155_p11 = scmp.lt.u32.totalorder %s1464_s25, %s1151_s10 }
 0x166   : > { %p1157_p0 = scmp.lt.u32.totalorder %s1151_s10, %s267_s16 }
 0x167   : > { %p1156_p13 = por %p1155_p11, %p1154_p9 }
 0x169   : > { %p1158_p8 = por %p1157_p0, %p1156_p13 }
 0x16b   : > { %p1159_p1 = pnand %p1158_p8, %p1152_p7 }
 0x16d   : > { %1162 = shalt.err (!%p1159_p1)  }
 0x16e   : > { %s1163_s22 = scalar_lea.vmem %s1781_s26, 16  ;;  %p1168_p3 = scmp.lt.s32.totalorder %s1781_s26, %s1472_s9 }
 0x16f   : > { %p1164_p2 = scmp.ne.s32.totalorder %s1781_s26, %s1163_s22  ;;  %p1169_p4 = scmp.lt.s32.totalorder %s1475_s23, %s1163_s22 }
 0x171   : > { %p1170_p5 = por %p1169_p4, %p1168_p3 }
 0x173   : > { %p1171_p6 = pnand %p1170_p5, %p1164_p2 }
 0x175   : > { %1174 = shalt.err (!%p1171_p6)  }
 0x176   : > { %279 = dma.hbm_to_vmem [thread:$0]  %s267_s16, 16, %s1781_s26, [#allocation3] }
 0x177   : > { %s283_s0 = scalar_lea.hbm %s1946_s4, %s733_s17  ;;  %s1818_s1 = sld [smem:[#allocation5 + %s296_s12]] }
 0x178   : > { %s1175_s11 = scalar_lea.hbm %s283_s0, 16  ;;  %p1178_p9 = scmp.lt.u32.totalorder %s283_s0, %s1946_s4 }
 0x179   : > { %p1176_p7 = scmp.ne.s32.totalorder %s283_s0, %s1175_s11  ;;  %p1179_p11 = scmp.lt.u32.totalorder %s1464_s25, %s1175_s11 }
 0x17a   : > { %p1181_p0 = scmp.lt.u32.totalorder %s1175_s11, %s283_s0 }
 0x17b   : > { %p1180_p13 = por %p1179_p11, %p1178_p9 }
 0x17d   : > { %p1182_p8 = por %p1181_p0, %p1180_p13 }
 0x17f   : > { %p1183_p1 = pnand %p1182_p8, %p1176_p7 }
 0x181   : > { %1186 = shalt.err (!%p1183_p1)  }
 0x182   : > { %s1187_s26 = scalar_lea.vmem %s1787_s13, 16  ;;  %p1192_p3 = scmp.lt.s32.totalorder %s1787_s13, %s1472_s9 }
 0x183   : > { %p1188_p2 = scmp.ne.s32.totalorder %s1787_s13, %s1187_s26  ;;  %p1193_p4 = scmp.lt.s32.totalorder %s1475_s23, %s1187_s26 }
 0x185   : > { %p1194_p5 = por %p1193_p4, %p1192_p3 }
 0x187   : > { %p1195_p6 = pnand %p1194_p5, %p1188_p2 }
 0x189   : > { %1198 = shalt.err (!%p1195_p6)  }
 0x18a   : > { %295 = dma.hbm_to_vmem [thread:$0]  %s283_s0, 16, %s1787_s13, [#allocation3] }
 0x18b   : > { %s300_s12 = scalar_lea.vmem %s1438_s28, 14 [#allocation9]  ;;  %s312_s19 = sadd.s32 7, %s1631_s30 }
 0x18c   : > { %s308_s16 = sshll.u32 %s300_s12, 4  ;;  %s313_s17 = sld [smem:[#allocation5 + %s312_s19]]  ;;  %s309_s16 = int_to_ptr.vmem [resolvable:$true] %s308_s16 }
 0x18d   : > { %s316_s10 = scalar_lea.vmem %s1438_s28, 15 [#allocation9]  ;;  %s1834_s20 = sld [smem:[#allocation8 + %s1335_s15]] }
 0x18e   : > { %s324_s2 = sshll.u32 %s316_s10, 4  ;;  %s734_s22 = sshll.u32 %s1818_s1, 4  ;;  %s1837_s2 = int_to_ptr.vmem [resolvable:$true] %s324_s2 }
 0x18f   : > { %s299_s11 = scalar_lea.hbm %s1946_s4, %s734_s22  ;;  %s1846_s13 = scalar_lea.hbm %s1947_s5, %s1432_s24 }
 0x190   : > { %s1199_s30 = scalar_lea.hbm %s299_s11, 16  ;;  %p1202_p9 = scmp.lt.u32.totalorder %s299_s11, %s1946_s4 }
 0x191   : > { %p1200_p7 = scmp.ne.s32.totalorder %s299_s11, %s1199_s30  ;;  %p1203_p11 = scmp.lt.u32.totalorder %s1464_s25, %s1199_s30 }
 0x192   : > { %p1205_p0 = scmp.lt.u32.totalorder %s1199_s30, %s299_s11 }
 0x193   : > { %p1204_p13 = por %p1203_p11, %p1202_p9 }
 0x195   : > { %p1206_p8 = por %p1205_p0, %p1204_p13 }
 0x197   : > { %p1207_p1 = pnand %p1206_p8, %p1200_p7 }
 0x199   : > { %1210 = shalt.err (!%p1207_p1)  }
 0x19a   : > { %s1211_s1 = scalar_lea.vmem %s309_s16, 16  ;;  %p1216_p3 = scmp.lt.s32.totalorder %s309_s16, %s1472_s9 }
 0x19b   : > { %p1212_p2 = scmp.ne.s32.totalorder %s309_s16, %s1211_s1  ;;  %p1217_p4 = scmp.lt.s32.totalorder %s1475_s23, %s1211_s1 }
 0x19d   : > { %p1218_p5 = por %p1217_p4, %p1216_p3 }
 0x19f   : > { %p1219_p6 = pnand %p1218_p5, %p1212_p2 }
 0x1a1   : > { %1222 = shalt.err (!%p1219_p6)  }
 0x1a2   : > { %311 = dma.hbm_to_vmem [thread:$0]  %s299_s11, 16, %s309_s16, [#allocation3] }
 0x1a3   : > { %s735_s12 = sshll.u32 %s313_s17, 4  ;;  %s1342_s7 = smov [#allocation2]  }
 0x1a4   : > { %s315_s22 = scalar_lea.hbm %s1946_s4, %s735_s12  ;;  %s344_s18 = sshll.u32 %s1342_s7, 4  ;;  %s345_s18 = int_to_ptr.vmem [resolvable:$true] %s344_s18 }
 0x1a5   : > { %s1223_s27 = scalar_lea.hbm %s315_s22, 16  ;;  %p1226_p9 = scmp.lt.u32.totalorder %s315_s22, %s1946_s4 }
 0x1a6   : > { %p1224_p7 = scmp.ne.s32.totalorder %s315_s22, %s1223_s27  ;;  %p1227_p11 = scmp.lt.u32.totalorder %s1464_s25, %s1223_s27 }
 0x1a7   : > { %p1229_p0 = scmp.lt.u32.totalorder %s1223_s27, %s315_s22 }
 0x1a8   : > { %p1228_p13 = por %p1227_p11, %p1226_p9 }
 0x1aa   : > { %p1230_p8 = por %p1229_p0, %p1228_p13 }
 0x1ac   : > { %p1231_p1 = pnand %p1230_p8, %p1224_p7 }
 0x1ae   : > { %1234 = shalt.err (!%p1231_p1)  }
 0x1af   : > { %s1235_s16 = scalar_lea.vmem %s1837_s2, 16  ;;  %p1240_p3 = scmp.lt.s32.totalorder %s1837_s2, %s1472_s9 }
 0x1b0   : > { %p1236_p2 = scmp.ne.s32.totalorder %s1837_s2, %s1235_s16  ;;  %p1241_p4 = scmp.lt.s32.totalorder %s1475_s23, %s1235_s16 }
 0x1b2   : > { %p1242_p5 = por %p1241_p4, %p1240_p3 }
 0x1b4   : > { %p1243_p6 = pnand %p1242_p5, %p1236_p2 }
 0x1b6   : > { %1246 = shalt.err (!%p1243_p6)  }
 0x1b7   : > { %327 = dma.hbm_to_vmem [thread:$0]  %s315_s22, 16, %s1837_s2, [#allocation3] }
 0x1b8   : > { %p781_p9 = scmp.gt.s32.totalorder %s1834_s20, 0  ;;  %s1247_s25 = scalar_lea.hbm %s1846_s13, 256 }
 0x1b9   : > { %p1248_p11 = scmp.ne.s32.totalorder %s1846_s13, %s1247_s25  ;;  %s1251_s0 = scalar_lea.hbm %s1947_s5, 512 }
 0x1ba   : > { %p1252_p8 = scmp.lt.u32.totalorder %s1846_s13, %s1947_s5  ;;  %p1253_p1 = scmp.lt.u32.totalorder %s1251_s0, %s1247_s25 }
 0x1bb   : > { %p1249_p13 = pnand %p1248_p11, %p781_p9  ;;  %p1255_p3 = scmp.lt.u32.totalorder %s1247_s25, %s1846_s13 }
 0x1bc   : > { %p1254_p2 = por %p1253_p1, %p1252_p8 }
 0x1bd   : > { %p1250_p0 = pneg %p1249_p13 }
 0x1be   : > { %p1256_p4 = por %p1255_p3, %p1254_p2 }
 0x1c0   : > { %p1257_p5 = pnand %p1256_p4, %p1250_p0 }
 0x1c2   : > { %1260 = shalt.err (!%p1257_p5)  }
 0x1c3   : > { %s1261_s2 = scalar_lea.vmem %s345_s18, 256  ;;  %p1268_p7 = scmp.lt.s32.totalorder %s345_s18, %s345_s18 }
 0x1c4   : > { %p1262_p6 = scmp.ne.s32.totalorder %s345_s18, %s1261_s2  ;;  %p1269_p12 = scmp.lt.s32.totalorder %s1261_s2, %s1261_s2 }
 0x1c6   : > { %p1263_p11 = pnand %p1262_p6, %p781_p9  ;;  %p1270_p10 = por %p1269_p12, %p1268_p7 }
 0x1c8   : > { %p1264_p13 = pneg %p1263_p11 }
 0x1ca   : > { %p1271_p1 = pnand %p1270_p10, %p1264_p13 }
 0x1cc   : > { %1274 = shalt.err (!%p1271_p1)  }
 0x1cd   : > { %774 = dma.hbm_to_vmem [thread:$0]  (%p781_p9), %s1846_s13, 256, %s345_s18, [#allocation3 + $0x1] }
 0x1ce   : > { %1317 = dma.done.wait [#allocation3], 256 }
 0x1cf   : > { %1318 = vsyncadd [#allocation3], 4294967040  ;;  %p1977_p0 = scmp.le.s32.totalorder %s1834_s20, 0 }
 0x1d1   : > { %506 = sbr.rel (%p1977_p0) target bundleno = 695 (0x2b7), region = 88 }
 0x1d8   : > { %1319 = dma.done.wait [#allocation3 + $0x1], 256 }
 0x1d9   : > { %1320 = vsyncadd [#allocation3 + $0x1], 4294967040  ;;  %vm518_vm3 = vcmask 130048   ;;  %v1343_v29 = vmov 0.0   ;;  %v512_v31 = vld [vmem:[#allocation2] sm:$0xff]  ;;  %v513_v32 = vld [vmem:[#allocation2 + $0x8] sm:$0xff] }
 0x1da   : > { %v741_v30 = vsel %vm1571_vm8, 1.0, %v1343_v29  ;;  %v769_v33 = vpack.c.bf16 %v513_v32, %v512_v31  ;;  %v742_v34 = vsel %vm1777_vm1, 1.0, %v1343_v29  ;;  %v601_v35 = vld [vmem:[%s1438_s28 + $0x8] sm:$0xff]  ;;  %v600_v36 = vld [vmem:[%s1438_s28] sm:$0xff] }
 0x1db   : > { %766 = vmatprep.mubr.msk.f32.mxu0 %vm518_vm3, %v741_v30 }
 0x1dc   : > { %770 = vmatprep.subr.bf16.mxu0 %v769_v33 }
 0x1dd   : > { %772 = vmatpush3.bf16.msra.mxu0 %v769_v33 }
 0x1e0   : > { %767 = vmatmul.mubr.msk.f32.vlgmr.msra.gmra.mrb[0].mxu0 %vm518_vm3, %v742_v34 }
 0x2b3   : > { %v768_v37 = vpop.f32.mrb[0].mxu0 }
 0x2b4   : > { %v603_v38 = vsel %vm460_vm15, %v768_v37, %v601_v35  ;;  %v591_v39 = vpop.f32.mrb[1].mxu0 }
 0x2b5   : > { %605 = vst [vmem:[%s1438_s28 + $0x8] sm:$0xff] %v603_v38  ;;  %v602_v40 = vsel %vm403_vm6, %v591_v39, %v600_v36 }
 0x2b6   : > { %604 = vst [vmem:[%s1438_s28] sm:$0xff] %v602_v40 }
 0x2b7 PF: > { %s619_s12 = scalar_lea.hbm %s1948_s6, %s1432_s24  ;;  %s1978_s19 = sand.u32 1, %s1331_s14  }
 0x2b8   : > { %s607_s10 = scalar_lea.sflag [#allocation10], %s1978_s19  ;;  %s1275_s22 = scalar_lea.vmem %s1443_s29, 256 }
 0x2b9   : > { %p1276_p10 = scmp.ne.s32.totalorder %s1443_s29, %s1275_s22  ;;  %p1979_p12 = scmp.ne.s32.totalorder %s1960_s21, 0 }
 0x2ba   : > { %p1283_p8 = scmp.lt.s32.totalorder %s1475_s23, %s1275_s22  ;;  %p1980_p2 = scmp.lt.s32.totalorder %s1443_s29, %s1472_s9 }
 0x2bb   : > { %p1277_p7 = pnand %p1276_p10, %p1979_p12 }
 0x2bc   : > { %p1284_p3 = por %p1283_p8, %p1980_p2 }
 0x2bd   : > { %p1278_p9 = pneg %p1277_p7 }
 0x2bf   : > { %p1285_p4 = pnand %p1284_p3, %p1278_p9 }
 0x2c1   : > { %1288 = shalt.err (!%p1285_p4)
}
 0x2c2   : > { %s1289_s28 = scalar_lea.hbm %s619_s12, 256  ;;  %s1293_s18 = scalar_lea.hbm %s1948_s6, 512 }
 0x2c3   : > { %p1290_p5 = scmp.ne.s32.totalorder %s619_s12, %s1289_s28  ;;  %p1294_p13 = scmp.lt.u32.totalorder %s619_s12, %s1948_s6 }
 0x2c4   : > { %p1295_p1 = scmp.lt.u32.totalorder %s1293_s18, %s1289_s28  ;;  %p1297_p10 = scmp.lt.u32.totalorder %s1289_s28, %s619_s12 }
 0x2c5   : > { %p1291_p6 = pnand %p1290_p5, %p1979_p12 }
 0x2c6   : > { %p1296_p0 = por %p1295_p1, %p1294_p13 }
 0x2c7   : > { %p1292_p11 = pneg %p1291_p6 }
 0x2c8   : > { %p1298_p7 = por %p1297_p10, %p1296_p0 }
 0x2ca   : > { %p1299_p9 = pnand %p1298_p7, %p1292_p11 }
 0x2cc   : > { %1302 = shalt.err (!%p1299_p9)
}
 0x2cd   : > { %s1344_s9 = smov 128   ;;  %s1345_s23 = smov 8  }
 0x2ce   : > { %775 = dma.vmem_to_hbm [thread:$0]  (%p1979_p12), %s1443_s29, 256, %s619_s12, %s607_s10, %s1344_s9, %s1344_s9, %s1345_s23  }
 0x2cf PF: > { %s1981_s30 = sld [smem:[#allocation53_spill]]  ;;  %p782_p8 = scmp.ge.s32.totalorder %s1335_s15, 1 }
 0x2d0   : > { %s635_s16 = sand.u32 1, %s1327_s3  }
 0x2d1   : > { %s636_s25 = scalar_lea.sflag [#allocation10], %s635_s16 }
 0x2d5   : > { %p1982_p2 = scmp.ne.s32.totalorder %s1981_s30, 0 }
 0x2d7   : > { %p778_p3 = pnand %p782_p8, %p1982_p2 }
 0x2d9   : > { %1322 = dma.done.wait (!%p778_p3), %s636_s25, 256  }
 0x2da   : > { %1324 = vsyncadd (!%p778_p3), %s636_s25, 4294967040  ;;  %s1983_s15 = sld [smem:[#allocation51_spill]]  ;;  %s1984_s17 = sld [smem:[#allocation52_spill]] }
 0x2db   : > { %s1985_s3 = smov %s1331_s14 }
 0x2e0   : > { %p34_p4 = scmp.ge.s32.totalorder %s1983_s15, 3   ;;  %s1986_s14 = smov %s1984_s17 }
 0x2e2   :  { %36 = sbr.rel (!%p34_p4) target bundleno = 49 (0x31), region = 155 }
 0x2e9   :  { %641 = vsyncpa [#allocation10], 1 }
 0x2ea   :  { %643 = vsyncpa [#allocation10 + $0x1], 1 }
 0x2eb   :  { %644 = vsyncmov [#allocation3] }
 0x2ee   :  { %s645_s21 = vpop.sfrf %644 }
 0x2ef   :  { %p750_p12 = scmp.ne.s32.totalorder %s645_s21, 0 }
 0x2f1   :  { %649 = shalt.err (%p750_p12)  }
 0x2f2   :  { %651 = vsyncmov [#allocation3 + $0x1] }
 0x2f5   :  { %s652_s29 = vpop.sfrf %651 }
 0x2f6   :  { %p751_p5 = scmp.ne.s32.totalorder %s652_s29, 0 }
 0x2f8   :  { %656 = shalt.err (%p751_p5)  }

</bundles_post_ra>
